<compile_context>
chip_gen: v7x
topology: tpu7x:2x2x1
jax: 0.10.0
libtpu: 0.0.40
codegen_flags: <defaults>
</compile_context>

<pallas_src>
import numpy as np
import jax
import jax.numpy as jnp
from jax.experimental import pallas as pl
from jax.experimental.pallas import tpu as pltpu

LSTM_ARCH = (16, 32, 32)        # two LSTM layers: 16->32, 32->32
TAIL_ARCH = (32, 32, 32, 16)    # three Linear layers: 32->32, 32->32, 32->16
IS_ENCODER = False              # decoder => final tanh
LANES = 128
H = 32                          # hidden size; 4*H == LANES
IN = LSTM_ARCH[0]
BM = 8                          # batch rows per grid block (one sublane group)
X_LANE = H                      # x occupies lanes 32:48 of the layer-0 LHS (h0 at 0:32)

# Weight-slab row offsets (every section starts on a sublane boundary).
L0_W, L0_B = 0, 128             # layer-0 [Wh0 rows 0:32 | Wx0 rows 32:48 | 0], bias
L1_W, L1_B = 136, 264           # layer-1 [Wx1 rows 0:32 | Wh1 rows 32:64 | 0], bias
T0_W, T0_B = 272, 400
T1_W, T1_B = 408, 536
T2_W, T2_B = 544, 672
POST_ROW, OFF_ROW = 680, 681    # gate post-scale / offset rows (sigmoid-via-tanh)
W_ROWS = 688


def _sigmoid(z):
    # sigmoid via tanh (exact); same formula in kernel and reference.
    return 0.5 * jnp.tanh(0.5 * z) + 0.5


def translation_fwd_kernel(w_ref, x_ref, o_ref, st_ref, h_ref, c_ref):
    t = pl.program_id(1)

    @pl.when(t == 0)
    def _():  # reset_state(): zero (h, c) at the start of each sequence block
        h_ref[...] = jnp.zeros_like(h_ref)
        c_ref[...] = jnp.zeros_like(c_ref)

    post = w_ref[POST_ROW:POST_ROW + 1, :]      # 0.5 on sigmoid lanes, 1.0 on g lanes
    off = w_ref[OFF_ROW:OFF_ROW + 1, :]         # 0.5 on sigmoid lanes, 0.0 on g lanes
    zeros96 = jnp.zeros((BM, LANES - H), jnp.float32)
    zeros64 = jnp.zeros((BM, LANES - 2 * H), jnp.float32)
    zerosH = jnp.zeros((BM, H), jnp.float32)

    def cell(lhs, c_prev, w_row, b_row):
        # One full-width MXU push for all four gates; 0.5 pre-scale is folded
        # into the packed weights/bias, so one tanh covers sigmoid(i,f,o)+tanh(g).
        gates = jnp.dot(lhs, w_ref[w_row:w_row + LANES, :],
                        preferred_element_type=jnp.float32) + w_ref[b_row:b_row + 1, :]
        acts = jnp.tanh(gates) * post + off     # [sig(i) | sig(f) | tanh(g) | sig(o)]
        i = acts[:, 0:H]
        f = acts[:, H:2 * H]
        g = acts[:, 2 * H:3 * H]
        o = acts[:, 3 * H:4 * H]
        c_new = f * c_prev + i * g
        h_new = o * jnp.tanh(c_new)
        return h_new, c_new

    # ---- LSTM layer 0 (+ relu feeding layer 1) ----
    lhs0 = x_ref[...] + h_ref[0]                # x at lanes 32:48, h0_prev at 0:32 (vadd)
    h0, c0 = cell(lhs0, c_ref[0], L0_W, L0_B)
    h0_full = jnp.concatenate([h0, zeros96], axis=1)
    a0 = jnp.maximum(h0_full, 0.0)
    h_ref[0] = h0_full                          # raw h carried (relu only feeds next layer)
    c_ref[0] = c0

    # ---- LSTM layer 1 (+ relu feeding tail) ----
    h1_prev = h_ref[1]                          # pre-positioned at lanes 32:64
    lhs1 = a0 + h1_prev
    h1, c1 = cell(lhs1, c_ref[1], L1_W, L1_B)
    h1_full = jnp.concatenate([h1, zeros96], axis=1)
    a1 = jnp.maximum(h1_full, 0.0)
    h_ref[1] = jnp.concatenate([zerosH, h1, zeros64], axis=1)
    c_ref[1] = c1

    # ---- tail: Linear, Linear+relu, Linear+tanh (decoder) ----
    t0 = jnp.dot(a1, w_ref[T0_W:T0_W + LANES, :],
                 preferred_element_type=jnp.float32) + w_ref[T0_B:T0_B + 1, :]
    t1 = jnp.maximum(jnp.dot(t0, w_ref[T1_W:T1_W + LANES, :],
                             preferred_element_type=jnp.float32) + w_ref[T1_B:T1_B + 1, :], 0.0)
    t2 = jnp.dot(t1, w_ref[T2_W:T2_W + LANES, :],
                 preferred_element_type=jnp.float32) + w_ref[T2_B:T2_B + 1, :]
    t2 = jnp.maximum(t2, 0.0) if IS_ENCODER else jnp.tanh(t2)

    # Single lane-dense, unmasked (BM, 640) store per step.
    o_ref[...] = jnp.concatenate([a0, a1, t0, t1, t2], axis=1)

    @pl.when(t == pl.num_programs(1) - 1)
    def _():  # emit final (h0, c0, h1, c1) so statefulness can chain across calls
        st_ref[...] = jnp.concatenate(
            [h0_full,
             jnp.concatenate([c0, zeros96], axis=1),
             h1_full,
             jnp.concatenate([c1, zeros96], axis=1)], axis=1)


# ----------------------------------------------------------------------------
# Host-side parameter init / packing
# ----------------------------------------------------------------------------
def _init_lstm(key, din, h):
    # PyTorch nn.LSTM layout: weight_ih (4h, din), weight_hh (4h, h), gates (i,f,g,o).
    k1, k2, k3, k4 = jax.random.split(key, 4)
    s = 1.0 / np.sqrt(h)
    w_ih = jax.random.uniform(k1, (4 * h, din), jnp.float32, -s, s)
    w_hh = jax.random.uniform(k2, (4 * h, h), jnp.float32, -s, s)
    b_ih = jax.random.uniform(k3, (4 * h,), jnp.float32, -s, s)
    b_hh = jax.random.uniform(k4, (4 * h,), jnp.float32, -s, s)
    return w_ih.T, w_hh.T, (b_ih + b_hh).reshape(1, 4 * h)


def _init_linear(key, din, dout):
    k1, k2 = jax.random.split(key)
    s = 1.0 / np.sqrt(din)
    w = jax.random.uniform(k1, (dout, din), jnp.float32, -s, s)
    b = jax.random.uniform(k2, (dout,), jnp.float32, -s, s)
    return w.T, b.reshape(1, dout)


def init_params(key):
    ks = jax.random.split(key, 5)
    wx0, wh0, b0 = _init_lstm(ks[0], LSTM_ARCH[0], LSTM_ARCH[1])
    wx1, wh1, b1 = _init_lstm(ks[1], LSTM_ARCH[1], LSTM_ARCH[2])
    tw0, tb0 = _init_linear(ks[2], TAIL_ARCH[0], TAIL_ARCH[1])
    tw1, tb1 = _init_linear(ks[3], TAIL_ARCH[1], TAIL_ARCH[2])
    tw2, tb2 = _init_linear(ks[4], TAIL_ARCH[2], TAIL_ARCH[3])
    return dict(wx0=wx0, wh0=wh0, b0=b0, wx1=wx1, wh1=wh1, b1=b1,
                tw0=tw0, tb0=tb0, tw1=tw1, tb1=tb1, tw2=tw2, tb2=tb2)


def pack_weights(p):
    """Build the single (688, 128) f32 weight slab (sigmoid pre-scale folded in)."""
    is_g = np.zeros((LANES,), bool)
    is_g[2 * H:3 * H] = True
    post = np.where(is_g, 1.0, 0.5).astype(np.float32)   # also the folded pre-scale
    off = np.where(is_g, 0.0, 0.5).astype(np.float32)

    slab = np.zeros((W_ROWS, LANES), np.float32)

    blk = np.zeros((LANES, LANES), np.float32)            # layer 0: [h0 | x | 0] LHS
    blk[0:H, :] = np.asarray(p["wh0"])
    blk[X_LANE:X_LANE + IN, :] = np.asarray(p["wx0"])
    slab[L0_W:L0_W + LANES, :] = blk * post[None, :]
    slab[L0_B, :] = np.asarray(p["b0"]).reshape(-1) * post

    blk = np.zeros((LANES, LANES), np.float32)             # layer 1: [a0 | h1 | 0] LHS
    blk[0:H, :] = np.asarray(p["wx1"])
    blk[H:2 * H, :] = np.asarray(p["wh1"])
    slab[L1_W:L1_W + LANES, :] = blk * post[None, :]
    slab[L1_B, :] = np.asarray(p["b1"]).reshape(-1) * post

    def put_tail(wrow, brow, w, b):
        w = np.asarray(w); b = np.asarray(b).reshape(-1)
        slab[wrow:wrow + w.shape[0], :w.shape[1]] = w
        slab[brow, :b.shape[0]] = b

    put_tail(T0_W, T0_B, p["tw0"], p["tb0"])
    put_tail(T1_W, T1_B, p["tw1"], p["tb1"])
    put_tail(T2_W, T2_B, p["tw2"], p["tb2"])

    slab[POST_ROW, :] = post
    slab[OFF_ROW, :] = off
    return jnp.asarray(slab)


# ----------------------------------------------------------------------------
# Forward pass wrapper
# ----------------------------------------------------------------------------
def translation_forward(x, wslab):
    """x: (T, B, IN) f32, B % 8 == 0.  Returns ([x, a0, a1, t0, t1, t2], final_state)."""
    T_, B, _ = x.shape
    assert B % BM == 0
    nb = B // BM
    # Pad x into its layer-0 LHS lanes once, amortized over the whole sequence.
    x_pad = jnp.zeros((T_, B, LANES), jnp.float32).at[:, :, X_LANE:X_LANE + IN].set(x)

    flops = 2 * T_ * B * LANES * LANES * 5
    transcendentals = T_ * B * (2 * LANES + 2 * H + TAIL_ARCH[-1])
    bytes_accessed = 4 * (W_ROWS * LANES + T_ * B * LANES + T_ * B * 5 * LANES + B * 4 * LANES)

    out, st = pl.pallas_call(
        translation_fwd_kernel,
        grid_spec=pltpu.PrefetchScalarGridSpec(
            num_scalar_prefetch=0,
            grid=(nb, T_),                                  # (batch blocks, decode steps)
            in_specs=[
                pl.BlockSpec((W_ROWS, LANES), lambda b, t: (0, 0)),      # VMEM-resident weights
                pl.BlockSpec((None, BM, LANES), lambda b, t: (t, b, 0)),  # per-step x block
            ],
            out_specs=[
                pl.BlockSpec((None, BM, 5 * LANES), lambda b, t: (t, b, 0)),
                pl.BlockSpec((BM, 4 * LANES), lambda b, t: (b, 0)),       # final states
            ],
            scratch_shapes=[
                pltpu.VMEM((2, BM, LANES), jnp.float32),   # h0 (lanes 0:32), h1 (lanes 32:64)
                pltpu.VMEM((2, BM, H), jnp.float32),       # c0, c1
            ]),
        out_shape=(jax.ShapeDtypeStruct((T_, B, 5 * LANES), jnp.float32),
                   jax.ShapeDtypeStruct((B, 4 * LANES), jnp.float32)),
        compiler_params=pltpu.CompilerParams(
            dimension_semantics=("parallel", "arbitrary")),
        cost_estimate=pl.CostEstimate(flops=flops, transcendentals=transcendentals,
                                      bytes_accessed=bytes_accessed),
    )(wslab, x_pad)

    a0 = out[:, :, 0:H]
    a1 = out[:, :, LANES:LANES + H]
    t0 = out[:, :, 2 * LANES:2 * LANES + TAIL_ARCH[1]]   # PyTorch .view(1,1,lstm_out) per step
    t1 = out[:, :, 3 * LANES:3 * LANES + TAIL_ARCH[2]]
    t2 = out[:, :, 4 * LANES:4 * LANES + TAIL_ARCH[3]]
    state = dict(h0=st[:, 0:H], c0=st[:, LANES:LANES + H],
                 h1=st[:, 2 * LANES:2 * LANES + H], c1=st[:, 3 * LANES:3 * LANES + H])
    return [x, a0, a1, t0, t1, t2], state


translation_forward = jax.jit(translation_forward)


# ----------------------------------------------------------------------------
# Plain-JAX reference (same semantics, stateful recurrence) for validation
# ----------------------------------------------------------------------------
def reference_forward(x, p):
    T_, B, _ = x.shape
    h0 = jnp.zeros((B, H)); c0 = jnp.zeros((B, H))
    h1 = jnp.zeros((B, H)); c1 = jnp.zeros((B, H))

    def cell(xin, h, c, wx, wh, b):
        z = xin @ wx + h @ wh + b
        i = _sigmoid(z[:, 0:H]); f = _sigmoid(z[:, H:2 * H])
        g = jnp.tanh(z[:, 2 * H:3 * H]); o = _sigmoid(z[:, 3 * H:4 * H])
        c_new = f * c + i * g
        return o * jnp.tanh(c_new), c_new

    a0s, a1s, t0s, t1s, t2s = [], [], [], [], []
    for t in range(T_):
        h0, c0 = cell(x[t], h0, c0, p["wx0"], p["wh0"], p["b0"])
        a0 = jnp.maximum(h0, 0.0)
        h1, c1 = cell(a0, h1, c1, p["wx1"], p["wh1"], p["b1"])
        a1 = jnp.maximum(h1, 0.0)
        t0 = a1 @ p["tw0"] + p["tb0"]
        t1 = jnp.maximum(t0 @ p["tw1"] + p["tb1"], 0.0)
        t2 = t1 @ p["tw2"] + p["tb2"]
        t2 = jnp.maximum(t2, 0.0) if IS_ENCODER else jnp.tanh(t2)
        a0s.append(a0); a1s.append(a1); t0s.append(t0); t1s.append(t1); t2s.append(t2)

    stacked = [jnp.stack(v, axis=0) for v in (a0s, a1s, t0s, t1s, t2s)]
    return stacked, dict(h0=h0, c0=c0, h1=h1, c1=c1)


if __name__ == "__main__":
    jax.config.update("jax_default_matmul_precision", "highest")
    key = jax.random.PRNGKey(0)
    k_x, k_p = jax.random.split(key)

    T_, B = 8, 16                                           # 8 decode steps, 16 sequences
    x = jax.random.normal(k_x, (T_, B, IN), jnp.float32)
    params = init_params(k_p)
    wslab = pack_weights(params)

    outs, state = translation_forward(x, wslab)
    jax.block_until_ready(outs[-1])

    refs, ref_state = reference_forward(x, params)
    for got, want in zip(outs[1:], refs):
        np.testing.assert_allclose(np.asarray(got), np.asarray(want), rtol=5e-4, atol=1e-4)
    for k in ("h0", "c0", "h1", "c1"):
        np.testing.assert_allclose(np.asarray(state[k]), np.asarray(ref_state[k]),
                                   rtol=5e-4, atol=1e-4)

    print("KERNEL_OK")
</pallas_src>

<mosaic_0001>
module attributes {stable_mosaic.version = 11 : i64} {
  func.func @translation_fwd_kernel(%arg0: i32, %arg1: i32, %arg2: memref<688x128xf32, #tpu.memory_space<vmem>>, %arg3: memref<1x8x128xf32, #tpu.memory_space<vmem>>, %arg4: memref<1x8x640xf32, #tpu.memory_space<vmem>>, %arg5: memref<8x512xf32, #tpu.memory_space<vmem>>, %arg6: memref<2x8x128xf32, #tpu.memory_space<vmem>>, %arg7: memref<2x8x32xf32, #tpu.memory_space<vmem>>) attributes {dimension_semantics = [#tpu.dimension_semantics<parallel>, #tpu.dimension_semantics<arbitrary>], iteration_bounds = array<i64: 2, 8>, scalar_prefetch = 0 : i64, scratch_operands = 2 : i64, tpu.core_type = #tpu.core_type<tc>, window_params = [{pipeline_mode = #tpu.pipeline_mode<synchronous>, transform_indices = @transform_0, window_bounds = array<i64: 688, 128>}, {transform_indices = @transform_1, window_bounds = array<i64: 1, 8, 128>}, {transform_indices = @transform_2, window_bounds = array<i64: 1, 8, 640>}, {transform_indices = @transform_3, window_bounds = array<i64: 8, 512>}]} {
    %c0_i32 = arith.constant 0 : i32
    %0 = arith.cmpi eq, %arg1, %c0_i32 : i32
    %1 = arith.extui %0 : i1 to i32
    %c0_i32_0 = arith.constant 0 : i32
    %2 = arith.cmpi ne, %1, %c0_i32_0 : i32
    scf.if %2 {
      %cst_53 = arith.constant 0.000000e+00 : f32
      %102 = vector.broadcast %cst_53 : f32 to vector<2x8x128xf32>
      %c0_54 = arith.constant 0 : index
      %c0_55 = arith.constant 0 : index
      %c0_56 = arith.constant 0 : index
      %103 = vector.load %arg6[%c0_54, %c0_55, %c0_56] : memref<2x8x128xf32, #tpu.memory_space<vmem>>, vector<2x8x128xf32>
      tpu.vector_store %arg6[%c0_54, %c0_55, %c0_56], %102 {strides = array<i32>} : memref<2x8x128xf32, #tpu.memory_space<vmem>>, vector<2x8x128xf32>,
      %cst_57 = arith.constant 0.000000e+00 : f32
      %104 = vector.broadcast %cst_57 : f32 to vector<2x8x32xf32>
      %c0_58 = arith.constant 0 : index
      %c0_59 = arith.constant 0 : index
      %c0_60 = arith.constant 0 : index
      %105 = vector.load %arg7[%c0_58, %c0_59, %c0_60] : memref<2x8x32xf32, #tpu.memory_space<vmem>>, vector<2x8x32xf32>
      tpu.vector_store %arg7[%c0_58, %c0_59, %c0_60], %104 {strides = array<i32>} : memref<2x8x32xf32, #tpu.memory_space<vmem>>, vector<2x8x32xf32>,
    } else {
    }
    %c680 = arith.constant 680 : index
    %c0 = arith.constant 0 : index
    %3 = vector.load %arg2[%c680, %c0] : memref<688x128xf32, #tpu.memory_space<vmem>>, vector<1x128xf32>
    %c681 = arith.constant 681 : index
    %c0_1 = arith.constant 0 : index
    %4 = vector.load %arg2[%c681, %c0_1] : memref<688x128xf32, #tpu.memory_space<vmem>>, vector<1x128xf32>
    %cst = arith.constant 0.000000e+00 : f32
    %5 = vector.broadcast %cst : f32 to vector<8x96xf32>
    %cst_2 = arith.constant 0.000000e+00 : f32
    %6 = vector.broadcast %cst_2 : f32 to vector<8x64xf32>
    %cst_3 = arith.constant 0.000000e+00 : f32
    %7 = vector.broadcast %cst_3 : f32 to vector<8x32xf32>
    %c0_4 = arith.constant 0 : index
    %c0_5 = arith.constant 0 : index
    %c0_6 = arith.constant 0 : index
    %8 = vector.load %arg3[%c0_4, %c0_5, %c0_6] : memref<1x8x128xf32, #tpu.memory_space<vmem>>, vector<1x8x128xf32>
    %9 = vector.shape_cast %8 : vector<1x8x128xf32> to vector<8x128xf32>
    %c0_7 = arith.constant 0 : index
    %c0_8 = arith.constant 0 : index
    %c0_9 = arith.constant 0 : index
    %10 = vector.load %arg6[%c0_7, %c0_8, %c0_9] : memref<2x8x128xf32, #tpu.memory_space<vmem>>, vector<1x8x128xf32>
    %11 = vector.shape_cast %10 : vector<1x8x128xf32> to vector<8x128xf32>
    %12 = arith.addf %9, %11 : vector<8x128xf32>
    %c0_10 = arith.constant 0 : index
    %c0_11 = arith.constant 0 : index
    %c0_12 = arith.constant 0 : index
    %13 = vector.load %arg7[%c0_10, %c0_11, %c0_12] : memref<2x8x32xf32, #tpu.memory_space<vmem>>, vector<1x8x32xf32>
    %14 = vector.shape_cast %13 : vector<1x8x32xf32> to vector<8x32xf32>
    %c0_13 = arith.constant 0 : index
    %c0_14 = arith.constant 0 : index
    %15 = vector.load %arg2[%c0_13, %c0_14] : memref<688x128xf32, #tpu.memory_space<vmem>>, vector<128x128xf32>
    %cst_15 = arith.constant dense<0.000000e+00> : vector<8x128xf32>
    %16 = tpu.matmul %12, %15, %cst_15 {dimension_numbers = #tpu.dot_dimension_numbers<[1], [0], [0], [1], [0, 0, 1, 1], [], []>, precision = #tpu.contract_precision<fp32>} : vector<8x128xf32>, vector<128x128xf32>, vector<8x128xf32> -> vector<8x128xf32>
    %c128 = arith.constant 128 : index
    %c0_16 = arith.constant 0 : index
    %17 = vector.load %arg2[%c128, %c0_16] : memref<688x128xf32, #tpu.memory_space<vmem>>, vector<1x128xf32>
    %18 = vector.broadcast %17 : vector<1x128xf32> to vector<8x128xf32>
    %19 = arith.addf %16, %18 : vector<8x128xf32>
    %20 = math.tanh %19 : vector<8x128xf32>
    %21 = vector.broadcast %3 : vector<1x128xf32> to vector<8x128xf32>
    %22 = arith.mulf %20, %21 : vector<8x128xf32>
    %23 = vector.broadcast %4 : vector<1x128xf32> to vector<8x128xf32>
    %24 = arith.addf %22, %23 : vector<8x128xf32>
    %25 = vector.extract_strided_slice %24 {offsets = [0, 0], sizes = [8, 32], strides = [1, 1]} : vector<8x128xf32> to vector<8x32xf32>
    %26 = vector.extract_strided_slice %24 {offsets = [0, 32], sizes = [8, 32], strides = [1, 1]} : vector<8x128xf32> to vector<8x32xf32>
    %27 = vector.extract_strided_slice %24 {offsets = [0, 64], sizes = [8, 32], strides = [1, 1]} : vector<8x128xf32> to vector<8x32xf32>
    %28 = vector.extract_strided_slice %24 {offsets = [0, 96], sizes = [8, 32], strides = [1, 1]} : vector<8x128xf32> to vector<8x32xf32>
    %29 = arith.mulf %26, %14 : vector<8x32xf32>
    %30 = arith.mulf %25, %27 : vector<8x32xf32>
    %31 = arith.addf %29, %30 : vector<8x32xf32>
    %32 = math.tanh %31 : vector<8x32xf32>
    %33 = arith.mulf %28, %32 : vector<8x32xf32>
    %34 = tpu.concatenate %33, %5 in 1 : vector<8x32xf32>, vector<8x96xf32> -> vector<8x128xf32>
    %cst_17 = arith.constant 0.000000e+00 : f32
    %35 = vector.broadcast %cst_17 : f32 to vector<8x128xf32>
    %36 = arith.maximumf %34, %35 : vector<8x128xf32>
    %c0_18 = arith.constant 0 : index
    %c0_19 = arith.constant 0 : index
    %c0_20 = arith.constant 0 : index
    %37 = vector.load %arg6[%c0_18, %c0_19, %c0_20] : memref<2x8x128xf32, #tpu.memory_space<vmem>>, vector<1x8x128xf32>
    %38 = vector.shape_cast %37 : vector<1x8x128xf32> to vector<8x128xf32>
    %39 = vector.shape_cast %34 : vector<8x128xf32> to vector<1x8x128xf32>
    tpu.vector_store %arg6[%c0_18, %c0_19, %c0_20], %39 {strides = array<i32>} : memref<2x8x128xf32, #tpu.memory_space<vmem>>, vector<1x8x128xf32>,
    %c0_21 = arith.constant 0 : index
    %c0_22 = arith.constant 0 : index
    %c0_23 = arith.constant 0 : index
    %40 = vector.load %arg7[%c0_21, %c0_22, %c0_23] : memref<2x8x32xf32, #tpu.memory_space<vmem>>, vector<1x8x32xf32>
    %41 = vector.shape_cast %40 : vector<1x8x32xf32> to vector<8x32xf32>
    %42 = vector.shape_cast %31 : vector<8x32xf32> to vector<1x8x32xf32>
    tpu.vector_store %arg7[%c0_21, %c0_22, %c0_23], %42 {strides = array<i32>} : memref<2x8x32xf32, #tpu.memory_space<vmem>>, vector<1x8x32xf32>,
    %c1 = arith.constant 1 : index
    %c0_24 = arith.constant 0 : index
    %c0_25 = arith.constant 0 : index
    %43 = vector.load %arg6[%c1, %c0_24, %c0_25] : memref<2x8x128xf32, #tpu.memory_space<vmem>>, vector<1x8x128xf32>
    %44 = vector.shape_cast %43 : vector<1x8x128xf32> to vector<8x128xf32>
    %45 = arith.addf %36, %44 : vector<8x128xf32>
    %c1_26 = arith.constant 1 : index
    %c0_27 = arith.constant 0 : index
    %c0_28 = arith.constant 0 : index
    %46 = vector.load %arg7[%c1_26, %c0_27, %c0_28] : memref<2x8x32xf32, #tpu.memory_space<vmem>>, vector<1x8x32xf32>
    %47 = vector.shape_cast %46 : vector<1x8x32xf32> to vector<8x32xf32>
    %c136 = arith.constant 136 : index
    %c0_29 = arith.constant 0 : index
    %48 = vector.load %arg2[%c136, %c0_29] : memref<688x128xf32, #tpu.memory_space<vmem>>, vector<128x128xf32>
    %cst_30 = arith.constant dense<0.000000e+00> : vector<8x128xf32>
    %49 = tpu.matmul %45, %48, %cst_30 {dimension_numbers = #tpu.dot_dimension_numbers<[1], [0], [0], [1], [0, 0, 1, 1], [], []>, precision = #tpu.contract_precision<fp32>} : vector<8x128xf32>, vector<128x128xf32>, vector<8x128xf32> -> vector<8x128xf32>
    %c264 = arith.constant 264 : index
    %c0_31 = arith.constant 0 : index
    %50 = vector.load %arg2[%c264, %c0_31] : memref<688x128xf32, #tpu.memory_space<vmem>>, vector<1x128xf32>
    %51 = vector.broadcast %50 : vector<1x128xf32> to vector<8x128xf32>
    %52 = arith.addf %49, %51 : vector<8x128xf32>
    %53 = math.tanh %52 : vector<8x128xf32>
    %54 = vector.broadcast %3 : vector<1x128xf32> to vector<8x128xf32>
    %55 = arith.mulf %53, %54 : vector<8x128xf32>
    %56 = vector.broadcast %4 : vector<1x128xf32> to vector<8x128xf32>
    %57 = arith.addf %55, %56 : vector<8x128xf32>
    %58 = vector.extract_strided_slice %57 {offsets = [0, 0], sizes = [8, 32], strides = [1, 1]} : vector<8x128xf32> to vector<8x32xf32>
    %59 = vector.extract_strided_slice %57 {offsets = [0, 32], sizes = [8, 32], strides = [1, 1]} : vector<8x128xf32> to vector<8x32xf32>
    %60 = vector.extract_strided_slice %57 {offsets = [0, 64], sizes = [8, 32], strides = [1, 1]} : vector<8x128xf32> to vector<8x32xf32>
    %61 = vector.extract_strided_slice %57 {offsets = [0, 96], sizes = [8, 32], strides = [1, 1]} : vector<8x128xf32> to vector<8x32xf32>
    %62 = arith.mulf %59, %47 : vector<8x32xf32>
    %63 = arith.mulf %58, %60 : vector<8x32xf32>
    %64 = arith.addf %62, %63 : vector<8x32xf32>
    %65 = math.tanh %64 : vector<8x32xf32>
    %66 = arith.mulf %61, %65 : vector<8x32xf32>
    %67 = tpu.concatenate %66, %5 in 1 : vector<8x32xf32>, vector<8x96xf32> -> vector<8x128xf32>
    %cst_32 = arith.constant 0.000000e+00 : f32
    %68 = vector.broadcast %cst_32 : f32 to vector<8x128xf32>
    %69 = arith.maximumf %67, %68 : vector<8x128xf32>
    %70 = tpu.concatenate %7, %66, %6 in 1 : vector<8x32xf32>, vector<8x32xf32>, vector<8x64xf32> -> vector<8x128xf32>
    %c1_33 = arith.constant 1 : index
    %c0_34 = arith.constant 0 : index
    %c0_35 = arith.constant 0 : index
    %71 = vector.load %arg6[%c1_33, %c0_34, %c0_35] : memref<2x8x128xf32, #tpu.memory_space<vmem>>, vector<1x8x128xf32>
    %72 = vector.shape_cast %71 : vector<1x8x128xf32> to vector<8x128xf32>
    %73 = vector.shape_cast %70 : vector<8x128xf32> to vector<1x8x128xf32>
    tpu.vector_store %arg6[%c1_33, %c0_34, %c0_35], %73 {strides = array<i32>} : memref<2x8x128xf32, #tpu.memory_space<vmem>>, vector<1x8x128xf32>,
    %c1_36 = arith.constant 1 : index
    %c0_37 = arith.constant 0 : index
    %c0_38 = arith.constant 0 : index
    %74 = vector.load %arg7[%c1_36, %c0_37, %c0_38] : memref<2x8x32xf32, #tpu.memory_space<vmem>>, vector<1x8x32xf32>
    %75 = vector.shape_cast %74 : vector<1x8x32xf32> to vector<8x32xf32>
    %76 = vector.shape_cast %64 : vector<8x32xf32> to vector<1x8x32xf32>
    tpu.vector_store %arg7[%c1_36, %c0_37, %c0_38], %76 {strides = array<i32>} : memref<2x8x32xf32, #tpu.memory_space<vmem>>, vector<1x8x32xf32>,
    %c272 = arith.constant 272 : index
    %c0_39 = arith.constant 0 : index
    %77 = vector.load %arg2[%c272, %c0_39] : memref<688x128xf32, #tpu.memory_space<vmem>>, vector<128x128xf32>
    %cst_40 = arith.constant dense<0.000000e+00> : vector<8x128xf32>
    %78 = tpu.matmul %69, %77, %cst_40 {dimension_numbers = #tpu.dot_dimension_numbers<[1], [0], [0], [1], [0, 0, 1, 1], [], []>, precision = #tpu.contract_precision<fp32>} : vector<8x128xf32>, vector<128x128xf32>, vector<8x128xf32> -> vector<8x128xf32>
    %c400 = arith.constant 400 : index
    %c0_41 = arith.constant 0 : index
    %79 = vector.load %arg2[%c400, %c0_41] : memref<688x128xf32, #tpu.memory_space<vmem>>, vector<1x128xf32>
    %80 = vector.broadcast %79 : vector<1x128xf32> to vector<8x128xf32>
    %81 = arith.addf %78, %80 : vector<8x128xf32>
    %c408 = arith.constant 408 : index
    %c0_42 = arith.constant 0 : index
    %82 = vector.load %arg2[%c408, %c0_42] : memref<688x128xf32, #tpu.memory_space<vmem>>, vector<128x128xf32>
    %cst_43 = arith.constant dense<0.000000e+00> : vector<8x128xf32>
    %83 = tpu.matmul %81, %82, %cst_43 {dimension_numbers = #tpu.dot_dimension_numbers<[1], [0], [0], [1], [0, 0, 1, 1], [], []>, precision = #tpu.contract_precision<fp32>} : vector<8x128xf32>, vector<128x128xf32>, vector<8x128xf32> -> vector<8x128xf32>
    %c536 = arith.constant 536 : index
    %c0_44 = arith.constant 0 : index
    %84 = vector.load %arg2[%c536, %c0_44] : memref<688x128xf32, #tpu.memory_space<vmem>>, vector<1x128xf32>
    %85 = vector.broadcast %84 : vector<1x128xf32> to vector<8x128xf32>
    %86 = arith.addf %83, %85 : vector<8x128xf32>
    %cst_45 = arith.constant 0.000000e+00 : f32
    %87 = vector.broadcast %cst_45 : f32 to vector<8x128xf32>
    %88 = arith.maximumf %86, %87 : vector<8x128xf32>
    %c544 = arith.constant 544 : index
    %c0_46 = arith.constant 0 : index
    %89 = vector.load %arg2[%c544, %c0_46] : memref<688x128xf32, #tpu.memory_space<vmem>>, vector<128x128xf32>
    %cst_47 = arith.constant dense<0.000000e+00> : vector<8x128xf32>
    %90 = tpu.matmul %88, %89, %cst_47 {dimension_numbers = #tpu.dot_dimension_numbers<[1], [0], [0], [1], [0, 0, 1, 1], [], []>, precision = #tpu.contract_precision<fp32>} : vector<8x128xf32>, vector<128x128xf32>, vector<8x128xf32> -> vector<8x128xf32>
    %c672 = arith.constant 672 : index
    %c0_48 = arith.constant 0 : index
    %91 = vector.load %arg2[%c672, %c0_48] : memref<688x128xf32, #tpu.memory_space<vmem>>, vector<1x128xf32>
    %92 = vector.broadcast %91 : vector<1x128xf32> to vector<8x128xf32>
    %93 = arith.addf %90, %92 : vector<8x128xf32>
    %94 = math.tanh %93 : vector<8x128xf32>
    %95 = tpu.concatenate %36, %69, %81, %88, %94 in 1 : vector<8x128xf32>, vector<8x128xf32>, vector<8x128xf32>, vector<8x128xf32>, vector<8x128xf32> -> vector<8x640xf32>
    %c0_49 = arith.constant 0 : index
    %c0_50 = arith.constant 0 : index
    %c0_51 = arith.constant 0 : index
    %96 = vector.load %arg4[%c0_49, %c0_50, %c0_51] : memref<1x8x640xf32, #tpu.memory_space<vmem>>, vector<1x8x640xf32>
    %97 = vector.shape_cast %96 : vector<1x8x640xf32> to vector<8x640xf32>
    %98 = vector.shape_cast %95 : vector<8x640xf32> to vector<1x8x640xf32>
    tpu.vector_store %arg4[%c0_49, %c0_50, %c0_51], %98 {strides = array<i32>} : memref<1x8x640xf32, #tpu.memory_space<vmem>>, vector<1x8x640xf32>,
    %c7_i32 = arith.constant 7 : i32
    %99 = arith.cmpi eq, %arg1, %c7_i32 : i32
    %100 = arith.extui %99 : i1 to i32
    %c0_i32_52 = arith.constant 0 : i32
    %101 = arith.cmpi ne, %100, %c0_i32_52 : i32
    scf.if %101 {
      %102 = tpu.concatenate %31, %5 in 1 : vector<8x32xf32>, vector<8x96xf32> -> vector<8x128xf32>
      %103 = tpu.concatenate %64, %5 in 1 : vector<8x32xf32>, vector<8x96xf32> -> vector<8x128xf32>
      %104 = tpu.concatenate %34, %102, %67, %103 in 1 : vector<8x128xf32>, vector<8x128xf32>, vector<8x128xf32>, vector<8x128xf32> -> vector<8x512xf32>
      %c0_53 = arith.constant 0 : index
      %c0_54 = arith.constant 0 : index
      %105 = vector.load %arg5[%c0_53, %c0_54] : memref<8x512xf32, #tpu.memory_space<vmem>>, vector<8x512xf32>
      tpu.vector_store %arg5[%c0_53, %c0_54], %104 {strides = array<i32>} : memref<8x512xf32, #tpu.memory_space<vmem>>, vector<8x512xf32>,
    } else {
    }
    return
  }
  func.func @transform_0(%arg0: i32, %arg1: i32) -> (i32, i32) {
    %c0_i32 = arith.constant 0 : i32
    %c0_i32_0 = arith.constant 0 : i32
    %c0_i32_1 = arith.constant 0 : i32
    return %c0_i32, %c0_i32_0 : i32, i32
  }
  func.func @transform_1(%arg0: i32, %arg1: i32) -> (i32, i32, i32) {
    %c0_i32 = arith.constant 0 : i32
    %c0_i32_0 = arith.constant 0 : i32
    return %arg1, %arg0, %c0_i32 : i32, i32, i32
  }
  func.func @transform_2(%arg0: i32, %arg1: i32) -> (i32, i32, i32) {
    %c0_i32 = arith.constant 0 : i32
    %c0_i32_0 = arith.constant 0 : i32
    return %arg1, %arg0, %c0_i32 : i32, i32, i32
  }
  func.func @transform_3(%arg0: i32, %arg1: i32) -> (i32, i32) {
    %c0_i32 = arith.constant 0 : i32
    %c0_i32_0 = arith.constant 0 : i32
    return %arg0, %c0_i32 : i32, i32
  }
}

</mosaic_0001>

<bundles_post_ra>
// kernel: translation_forward.1
= control target key start
LH: loop header
LB: loop body
LE: loop exit
PB: predicated region body
PF: predicated region fallthrough
CT: control target
= control target key end

     0   :  { %9 = vsyncpa [#allocation5], 0  ;;  %s6336_s12 = smov 0   ;;  %s6338_s13 = smov 0   ;;  %s7862_s0 = inlined_call_operand.hbm [shape: f32[688,128], index: 0, kind: input, shape index: {}]   ;;  %s7863_s1 = inlined_call_operand.vmem [shape: f32[8,16,128], index: 1, kind: input, shape index: {}]   ;;  %s7864_s2 = inlined_call_operand.vmem [shape: f32[8,16,640], index: 2, kind: output, shape index: {0}]   ;;  %s7865_s3 = inlined_call_operand.vmem [shape: f32[16,512], index: 3, kind: output, shape index: {1}]  }
   0x1   :  { %s6340_s14 = smov 0   ;;  %s6342_s15 = smov 0  }
   0x2   :  { %s6344_s16 = smov 0  }
   0x3 LB: > { %s3804_s17 = sadd.s32 4294967295, %s6304_s16   ;;  %s24_s18 = sadd.s32 1, %s6296_s14  ;;  %s6304_s16 = sphi %s6344_s16, %s15_s16   ;;  %s6300_s15 = sphi %s6342_s15, %s7976_s15   ;;  %s6296_s14 = sphi %s6340_s14, %s7975_s14   ;;  %s6292_s13 = sphi %s6338_s13, %s7974_s13   ;;  %s6288_s12 = sphi %s6336_s12, %s7973_s12  }
   0x4   : > { %p25_p0 = scmp.ge.s32.totalorder %s24_s18, 8  ;;  %s27_s19 = sadd.s32 1, %s6300_s15 }
   0x5   : > { %p3806_p1 = scmp.ge.s32.totalorder %s6304_s16, 1  ;;  %p135_p2 = scmp.lt.s32.totalorder %s6304_s16, 17 }
   0x6   : > { %s7978_s18 = smov (%p25_p0, %s24_s18), 0  ;;  %s7980_s19 = smov (!%p25_p0, %s27_s19), %s6300_s15 }
   0x7   : > { %p6369_p3 = pnand %p3806_p1, %p135_p2  ;;  %p29_p4 = scmp.ge.s32.totalorder %s7980_s19, 2 }
   0x8   : > { %p6373_p5 = scmp.eq.s32.totalorder %s3804_s17, 0  ;;  %s6306_s22 = smov [#allocation4]  }
   0x9   : > { %s7919_s20 = scalar_select %p6369_p3, 1, 0 }
   0xa   : > { %s7920_s21 = scalar_select %p6373_p5, 1, 0 }
   0xb   : > { %p6168_p6 = pneg %p6369_p3  ;;  %s7982_s19 = smov (%p29_p4, %s7980_s19), 0 }
   0xc   : > { %s147_s23 = sshll.u32 %s6306_s22, 4  ;;  %s6234_s27 = scalar_lea.hbm %s7862_s0, 11008  ;;  %s148_s23 = int_to_ptr.vmem [resolvable:$true] %s147_s23 }
   0xd   : > { %p6383_p7 = pnand %p6373_p5, %p6168_p6  ;;  %p6235_p8 = scmp.ne.s32.totalorder %s7862_s0, %s6234_s27 }
   0xe   : > { %p6241_p12 = scmp.lt.u32.totalorder %s6234_s27, %s7862_s0 }
   0xf   : > { %p6236_p9 = pneg %p6383_p7 }
  0x11   : > { %p6237_p10 = pnand %p6236_p9, %p6235_p8 }
  0x13   : > { %p6238_p11 = pneg %p6237_p10 }
  0x15   : > { %p6243_p13 = pnand %p6241_p12, %p6238_p11 }
  0x17   : > { %6246 = shalt.err (!%p6243_p13)
}
  0x18   : > { %s6247_s5 = scalar_lea.vmem %s148_s23, 11008  ;;  %p6255_p4 = scmp.lt.s32.totalorder %s148_s23, %s148_s23 }
  0x19   : > { %p6248_p0 = scmp.ne.s32.totalorder %s148_s23, %s6247_s5  ;;  %p6256_p6 = scmp.lt.s32.totalorder %s6247_s5, %s6247_s5 }
  0x1b   : > { %p6250_p1 = pnand %p6248_p0, %p6236_p9  ;;  %p6257_p5 = por %p6256_p6, %p6255_p4 }
  0x1d   : > { %p6251_p2 = pneg %p6250_p1 }
  0x1f   : > { %p6258_p3 = pnand %p6257_p5, %p6251_p2 }
  0x21   : > { %6261 = shalt.err (!%p6258_p3)
}
  0x22   : > { %s6307_s6 = smov 128   ;;  %s6308_s7 = smov 8  }
  0x23   : > { %6171 = dma.hbm_to_vmem [thread:$0]  (!%p6383_p7), %s7862_s0, 11008, %s148_s23, [#allocation5], %s6307_s6, %s6307_s6, %s6308_s7  }
  0x24   : > { %p7922_p8 = scmp.ne.s32.totalorder %s7919_s20, 0 }
  0x25   : > { %p7923_p10 = scmp.ne.s32.totalorder (!%p7922_p8), %s7920_s21, 0 }
  0x26   : > { %174 = sbr.rel (%p7922_p8) target bundleno = 2914 (0xb62), region = 28 }
  0x2d   : > { %6283 = dma.done.wait (%p7923_p10), [#allocation5], 11008  }
  0x2e   : > { %6285 = vsyncadd (%p7923_p10), [#allocation5], 4294956288  ;;  %p210_p3 = scmp.lt.s32.totalorder %s6288_s12, 7  ;;  %p212_p5 = scmp.lt.s32.totalorder %s6292_s13, 1 }
  0x2f   : > { %p3816_p7 = scmp.ne.s32.totalorder %s6288_s12, 0 }
  0x30   : > { %s211_s10 = scalar_select %p210_p3, %s6288_s12, 7 }
  0x31   : > { %s7984_s13 = smov (!%p212_p5, %s6292_s13), 1  ;;  %235 = sbr.rel (%p3816_p7) target bundleno = 56 (0x38), region = 36 }
  0x32   : > { %s3811_s11 = sshll.u32 %s211_s10, 1  ;;  %s6163_s17 = smul.u32 10, %s211_s10  ;;  %vm238_vm0 = vcmask (!%p3816_p7), 261120   ;;  %v6309_v0 = vmov (!%p3816_p7), 0.0  }
  0x33   : > { %s215_s22 = sadd.s32 %s3811_s11, %s7984_s13  ;;  %s6162_s23 = smul.u32 5, %s7984_s13  ;;  %236 = vst [vmem:[#allocation2] sm:$0xff] (!%p3816_p7), %v6309_v0  ;;  %237 = vst [vmem:[#allocation2 + $0x8] sm:$0xff] (!%p3816_p7), %v6309_v0 }
  0x34   : > { %s3812_s20 = sshll.u32 %s215_s22, 3  ;;  %s3827_s24 = sshll.u32 %s7984_s13, 5  ;;  %239 = vst.msk [vmem:[#allocation3] sm:$0xff] (!%p3816_p7), %vm238_vm0, %v6309_v0  ;;  %240 = vst.msk [vmem:[#allocation3 + $0x8] sm:$0xff] (!%p3816_p7), %vm238_vm0, %v6309_v0 }
  0x35   : > { %s6416_s27 = scalar_lea.vmem %s7863_s1, %s3812_s20  ;;  %s224_s21 = sadd.s32 %s6163_s17, %s6162_s23 }
  0x36   : > { %s3813_s28 = sshll.u32 %s224_s21, 3  ;;  %s6421_s4 = scalar_lea.vmem %s7865_s3, %s3827_s24 }
  0x37   : > { %s6426_s7 = scalar_lea.vmem %s7864_s2, %s3813_s28 }
  0x38 PF: > { %v247_v1 = vld [vmem:[#allocation4] sm:$0xff]  ;;  %v248_v2 = vld [vmem:[#allocation4 + $0x8] sm:$0xff]  ;;  %v249_v3 = vld [vmem:[#allocation4 + $0x10] sm:$0xff]  ;;  %v6310_v4 = vmov 0.0|0.0   ;;  %vm6311_vm1 = vmmov 0   ;;  %v7909_v12 = vmov 0.0  }
  0x39   : > { %5388 = vmatprep.subr.bf16.mxu1 %v6310_v4  ;;  %5460 = vmatprep.subr.bf16.mxu0 %v6310_v4  ;;  %v269_v5 = vand.u32 4294901760, %v247_v1  ;;  %v272_v6 = vand.u32 4294901760, %v248_v2  ;;  %v250_v7 = vld [vmem:[#allocation4 + $0x18] sm:$0xff]  ;;  %v275_v8 = vand.u32 4294901760, %v249_v3  ;;  %v6431_v10 = vld [vmem:[#allocation4 + $0x20] sm:$0xff]  ;;  %v6433_v11 = vld [vmem:[#allocation4 + $0x28] sm:$0xff] }
  0x3a   : > { %v278_v9 = vand.u32 4294901760, %v250_v7  ;;  %4370 = vmatprep.mubr.msk.f32.mxu1 %vm6311_vm1, %v7909_v12  ;;  %4475 = vmatprep.mubr.msk.f32.mxu0 %vm6311_vm1, %v7909_v12  ;;  %v281_v15 = vand.u32 4294901760, %v6431_v10  ;;  %v284_v16 = vand.u32 4294901760, %v6433_v11  ;;  %v6449_v17 = vld [vmem:[#allocation4 + $0x30] sm:$0xff]  ;;  %v6451_v18 = vld [vmem:[#allocation4 + $0x38] sm:$0xff]  ;;  %v243_v22 = vld [vmem:[%s6416_s27] sm:$0xff] }
  0x3b   : > { %v6439_v13 = vpack.c.bf16 %v272_v6, %v269_v5  ;;  %v287_v20 = vand.u32 4294901760, %v6449_v17  ;;  %v290_v21 = vand.u32 4294901760, %v6451_v18  ;;  %v244_v23 = vld [vmem:[#allocation2] sm:$0xff]  ;;  %v6464_v25 = vld [vmem:[#allocation4 + $0x48] sm:$0xff]  ;;  %v6474_v30 = vld [vmem:[#allocation4 + $0x50] sm:$0xff]  ;;  %v6478_v32 = vsub.f32 %v247_v1, %v269_v5  ;;  %s6313_s13 = smov 64  }
  0x3c   : > { %v6443_v14 = vpack.c.bf16 %v278_v9, %v275_v8  ;;  %v6455_v19 = vpack.c.bf16 %v284_v16, %v281_v15  ;;  %v6462_v24 = vld [vmem:[#allocation4 + $0x40] sm:$0xff]  ;;  %v245_v26 = vadd.f32 %v244_v23, %v243_v22  ;;  %v296_v29 = vand.u32 4294901760, %v6464_v25  ;;  %v6476_v31 = vld [vmem:[#allocation4 + $0x58] sm:$0xff]  ;;  %v6494_v39 = vld [vmem:[#allocation4 + $0x68] sm:$0xff]  ;;  %s6314_s8 = smov 32   ;;  %s6315_s9 = smov 96  }
  0x3d   : > { %5390 = vmatpush3.bf16.msra.mxu1 %v6439_v13  ;;  %5462 = vmatpush3.bf16.msra.mxu0 %v6439_v13  ;;  %v6468_v27 = vpack.c.bf16 %v290_v21, %v287_v20  ;;  %v293_v28 = vand.u32 4294901760, %v6462_v24  ;;  %v6482_v34 = vsub.f32 %v248_v2, %v272_v6  ;;  %v299_v36 = vand.u32 4294901760, %v6474_v30  ;;  %v6490_v38 = vld [vmem:[#allocation4 + $0x60] sm:$0xff]  ;;  %v6513_v46 = vld [vmem:[#allocation4 + $0x70] sm:$0xff]  ;;  %v6515_v47 = vld [vmem:[#allocation4 + $0x78] sm:$0xff]  ;;  %p3824_p9 = scmp.ne.s32.totalorder %s6288_s12, 7 }
  0x3e   : > { %5391 = vmatprep.subr.bf16.mxu1 %v6310_v4  ;;  %5463 = vmatprep.subr.bf16.mxu0 %v6310_v4  ;;  %v6480_v33 = vand.u32 4294901760, %v245_v26  ;;  %v302_v37 = vand.u32 4294901760, %v6476_v31  ;;  %v6496_v40 = vsub.f32 %v249_v3, %v275_v8  ;;  %v6498_v41 = vsub.f32 %v250_v7, %v278_v9 }
  0x3f   : > { %v6486_v35 = vpack.c.bf16 %v296_v29, %v293_v28  ;;  %v305_v42 = vand.u32 4294901760, %v6490_v38  ;;  %v308_v45 = vand.u32 4294901760, %v6494_v39  ;;  %v362_v48 = vand.u32 4294901760, %v6478_v32 }
  0x40   : > { %v6502_v43 = vsub.f32 %v245_v26, %v6480_v33  ;;  %v6510_v44 = vpack.c.bf16 %v302_v37, %v299_v36  ;;  %v369_v49 = vand.u32 4294901760, %v6482_v34  ;;  %v6522_v50 = vsub.f32 %v6431_v10, %v281_v15 }
  0x41   : > { %5393 = vmatpush3.bf16.msra.mxu1 %v6443_v14  ;;  %5465 = vmatpush3.bf16.msra.mxu0 %v6443_v14  ;;  %v6525_v51 = vsub.f32 %v6433_v11, %v284_v16  ;;  %v311_v52 = vand.u32 4294901760, %v6513_v46  ;;  %v314_v53 = vand.u32 4294901760, %v6515_v47  ;;  %v376_v55 = vand.u32 4294901760, %v6496_v40 }
  0x42   : > { %5394 = vmatprep.subr.bf16.mxu1 %v6310_v4  ;;  %5466 = vmatprep.subr.bf16.mxu0 %v6310_v4  ;;  %v351_v54 = vand.u32 4294901760, %v6502_v43  ;;  %v6537_v56 = vpack.c.bf16 %v308_v45, %v305_v42  ;;  %v363_v57 = vsub.f32 %v6478_v32, %v362_v48  ;;  %v370_v58 = vsub.f32 %v6482_v34, %v369_v49 }
  0x43   : > { %v383_v59 = vand.u32 4294901760, %v6498_v41  ;;  %v6545_v60 = vsub.f32 %v6449_v17, %v287_v20  ;;  %v6548_v61 = vsub.f32 %v6451_v18, %v290_v21  ;;  %v377_v63 = vsub.f32 %v6496_v40, %v376_v55 }
  0x44   : > { %v352_v62 = vsub.f32 %v6502_v43, %v351_v54  ;;  %v390_v0 = vand.u32 4294901760, %v6522_v50  ;;  %v397_v1 = vand.u32 4294901760, %v6525_v51  ;;  %v6560_v2 = vpack.c.bf16 %v314_v53, %v311_v52 }
  0x45   : > { %5396 = vmatpush3.bf16.msra.mxu1 %v6455_v19  ;;  %5468 = vmatpush3.bf16.msra.mxu0 %v6455_v19  ;;  %v364_v3 = vand.u32 4294901760, %v363_v57  ;;  %v371_v5 = vand.u32 4294901760, %v370_v58  ;;  %v384_v6 = vsub.f32 %v6498_v41, %v383_v59  ;;  %v6566_v7 = vsub.f32 %v6462_v24, %v293_v28 }
  0x46   : > { %5397 = vmatprep.subr.bf16.mxu1 %v6310_v4  ;;  %5469 = vmatprep.subr.bf16.mxu0 %v6310_v4  ;;  %v6569_v8 = vsub.f32 %v6464_v25, %v296_v29  ;;  %v5485_v9 = vpack.c.bf16 %v369_v49, %v362_v48  ;;  %v353_v10 = vand.u32 4294901760, %v352_v62  ;;  %v378_v11 = vand.u32 4294901760, %v377_v63 }
  0x47   : > { %v391_v15 = vsub.f32 %v6522_v50, %v390_v0  ;;  %v398_v16 = vsub.f32 %v6525_v51, %v397_v1  ;;  %v5413_v17 = vpack.c.bf16 %v371_v5, %v364_v3  ;;  %v385_v18 = vand.u32 4294901760, %v384_v6 }
  0x48   : > { %v404_v20 = vand.u32 4294901760, %v6545_v60  ;;  %v411_v21 = vand.u32 4294901760, %v6548_v61  ;;  %v6582_v22 = vsub.f32 %v6474_v30, %v299_v36  ;;  %v6587_v23 = vsub.f32 %v6476_v31, %v302_v37 }
  0x49   : > { %5399 = vmatpush3.bf16.msra.mxu1 %v6468_v27  ;;  %5471 = vmatpush3.bf16.msra.mxu0 %v6468_v27  ;;  %v5488_v24 = vpack.c.bf16 %v383_v59, %v376_v55  ;;  %v392_v25 = vand.u32 4294901760, %v391_v15  ;;  %v399_v26 = vand.u32 4294901760, %v398_v16  ;;  %v418_v28 = vand.u32 4294901760, %v6566_v7 }
  0x4a   : > { %5400 = vmatprep.subr.bf16.mxu1 %v6310_v4  ;;  %5472 = vmatprep.subr.bf16.mxu0 %v6310_v4  ;;  %v5416_v29 = vpack.c.bf16 %v385_v18, %v378_v11  ;;  %v405_v48 = vsub.f32 %v6545_v60, %v404_v20  ;;  %v412_v30 = vsub.f32 %v6548_v61, %v411_v21  ;;  %v425_v36 = vand.u32 4294901760, %v6569_v8 }
  0x4b   : > { %v6598_v31 = vsub.f32 %v6490_v38, %v305_v42  ;;  %v6603_v37 = vsub.f32 %v6494_v39, %v308_v45  ;;  %v5419_v49 = vpack.c.bf16 %v399_v26, %v392_v25  ;;  %v419_v55 = vsub.f32 %v6566_v7, %v418_v28 }
  0x4c   : > { %v432_v57 = vand.u32 4294901760, %v6582_v22  ;;  %v406_v38 = vand.u32 4294901760, %v405_v48  ;;  %v413_v42 = vand.u32 4294901760, %v412_v30  ;;  %v426_v58 = vsub.f32 %v6569_v8, %v425_v36 }
  0x4d   : > { %5402 = vmatpush3.bf16.msra.mxu1 %v6486_v35  ;;  %5474 = vmatpush3.bf16.msra.mxu0 %v6486_v35  ;;  %v439_v39 = vand.u32 4294901760, %v6587_v23  ;;  %v6618_v45 = vsub.f32 %v6513_v46, %v311_v52  ;;  %v6623_v59 = vsub.f32 %v6515_v47, %v314_v53  ;;  %v5494_v62 = vpack.c.bf16 %v411_v21, %v404_v20 }
  0x4e   : > { %5403 = vmatprep.subr.bf16.mxu1 %v6310_v4  ;;  %5475 = vmatprep.subr.bf16.mxu0 %v6310_v4  ;;  %v420_v63 = vand.u32 4294901760, %v419_v55  ;;  %v5422_v3 = vpack.c.bf16 %v413_v42, %v406_v38  ;;  %v427_v5 = vand.u32 4294901760, %v426_v58  ;;  %v453_v46 = vand.u32 4294901760, %v6603_v37  ;;  %v960_v38 = vld [vmem:[#allocation4 + $0x90] sm:$0xff]  ;;  %v961_v42 = vld [vmem:[#allocation4 + $0x98] sm:$0xff] }
  0x4f   : > { %v440_v6 = vsub.f32 %v6587_v23, %v439_v39  ;;  %v5497_v47 = vpack.c.bf16 %v425_v36, %v418_v28  ;;  %v467_v16 = vand.u32 4294901760, %v6623_v59  ;;  %vm945_vm2 = vcmask 261120  }
  0x50   : > { %v454_v15 = vsub.f32 %v6603_v37, %v453_v46  ;;  %vm1655_vm3 = vcmask 523264  }
  0x51   : > { %5405 = vmatpush3.bf16.msra.mxu1 %v6510_v44  ;;  %5477 = vmatpush3.bf16.msra.mxu0 %v6510_v44  ;;  %v441_v11 = vand.u32 4294901760, %v440_v6  ;;  %v468_v25 = vsub.f32 %v6623_v59, %v467_v16  ;;  %v966_v6 = vld [vmem:[#allocation4 + $0xc0] sm:$0xff] }
  0x52   : > { %5406 = vmatprep.subr.bf16.mxu1 %v6310_v4  ;;  %5478 = vmatprep.subr.bf16.mxu0 %v6310_v4  ;;  %v455_v21 = vand.u32 4294901760, %v454_v15 }
  0x53   : > { %v469_v48 = vand.u32 4294901760, %v468_v25 }
  0x55   : > { %5408 = vmatpush3.bf16.msra.mxu1 %v6537_v56  ;;  %5480 = vmatpush3.bf16.msra.mxu0 %v6537_v56 }
  0x56   : > { %5409 = vmatprep.subr.bf16.mxu1 %v6310_v4  ;;  %5481 = vmatprep.subr.bf16.mxu0 %v6310_v4 }
  0x59   : > { %5411 = vmatpush3.bf16.msra.mxu1 %v6560_v2  ;;  %5483 = vmatpush3.bf16.msra.mxu0 %v6560_v2 }
  0x5a   : > { %5412 = vmatprep.subr.bf16.mxu1 %v6310_v4  ;;  %5484 = vmatprep.subr.bf16.mxu0 %v6310_v4 }
  0x5c   : > { %4371 = vmatmul.mubr.f32.vlgmr.msra.gmra.mrb[0].mxu1 %v353_v10  ;;  %4476 = vmatmul.mubr.f32.vlgmr.msra.gmra.mrb[0].mxu0 %v351_v54  ;;  %v5491_v54 = vpack.c.bf16 %v397_v1, %v390_v0  ;;  %v433_v0 = vsub.f32 %v6582_v22, %v432_v57  ;;  %v446_v1 = vand.u32 4294901760, %v6598_v31  ;;  %v5425_v10 = vpack.c.bf16 %v427_v5, %v420_v63  ;;  %v964_v63 = vld [vmem:[#allocation4 + $0xb0] sm:$0xff]  ;;  %v965_v5 = vld [vmem:[#allocation4 + $0xb8] sm:$0xff] }
  0x5d   : > { %5414 = vmatpush3.bf16.msra.mxu1 %v5413_v17  ;;  %5486 = vmatpush3.bf16.msra.mxu0 %v5485_v9  ;;  %v460_v9 = vand.u32 4294901760, %v6618_v45  ;;  %v5500_v17 = vpack.c.bf16 %v439_v39, %v432_v57  ;;  %v959_v57 = vld [vmem:[#allocation4 + $0x88] sm:$0xff]  ;;  %v984_v39 = vand.u32 4294901760, %v960_v38 }
  0x5e   : > { %5415 = vmatprep.subr.bf16.mxu1 %v6310_v4  ;;  %5487 = vmatprep.subr.bf16.mxu0 %v6310_v4  ;;  %v434_v52 = vand.u32 4294901760, %v433_v0  ;;  %v447_v53 = vsub.f32 %v6598_v31, %v446_v1  ;;  %v5503_v28 = vpack.c.bf16 %v453_v46, %v446_v1  ;;  %v981_v58 = vand.u32 4294901760, %v959_v57  ;;  %v967_v46 = vld [vmem:[#allocation4 + $0xc8] sm:$0xff] }
  0x5f   : > { %4405 = vmatprep.mubr.msk.f32.mxu1 %vm6311_vm1, %v7909_v12  ;;  %4510 = vmatprep.mubr.msk.f32.mxu0 %vm6311_vm1, %v7909_v12  ;;  %v5506_v36 = vpack.c.bf16 %v467_v16, %v460_v9 }
  0x60   : > { %v448_v18 = vand.u32 4294901760, %v447_v53  ;;  %v5428_v20 = vpack.c.bf16 %v441_v11, %v434_v52  ;;  %v6718_v52 = vsub.f32 %v959_v57, %v981_v58  ;;  %v6720_v53 = vsub.f32 %v960_v38, %v984_v39 }
  0x61   : > { %5417 = vmatpush3.bf16.msra.mxu1 %v5416_v29  ;;  %5489 = vmatpush3.bf16.msra.mxu0 %v5488_v24  ;;  %v461_v24 = vsub.f32 %v6618_v45, %v460_v9 }
  0x62   : > { %5418 = vmatprep.subr.bf16.mxu1 %v6310_v4  ;;  %5490 = vmatprep.subr.bf16.mxu0 %v6310_v4  ;;  %v5431_v26 = vpack.c.bf16 %v455_v21, %v448_v18  ;;  %v999_v18 = vand.u32 4294901760, %v965_v5  ;;  %v1005_v21 = vand.u32 4294901760, %v967_v46 }
  0x63   : > { %v462_v29 = vand.u32 4294901760, %v461_v24 }
  0x64   : > { %v6734_v25 = vsub.f32 %v965_v5, %v999_v18 }
  0x65   : > { %5420 = vmatpush3.bf16.msra.mxu1 %v5419_v49  ;;  %5492 = vmatpush3.bf16.msra.mxu0 %v5491_v54  ;;  %v5434_v30 = vpack.c.bf16 %v469_v48, %v462_v29  ;;  %v5437_v49 = vpack.c.bf16 %v6482_v34, %v6478_v32  ;;  %v5440_v54 = vpack.c.bf16 %v6498_v41, %v6496_v40 }
  0x66   : > { %5421 = vmatprep.subr.bf16.mxu1 %v6310_v4  ;;  %5493 = vmatprep.subr.bf16.mxu0 %v6310_v4  ;;  %v5443_v32 = vpack.c.bf16 %v6525_v51, %v6522_v50  ;;  %v5458_v34 = vpack.c.bf16 %v6623_v59, %v6618_v45  ;;  %v962_v45 = vld [vmem:[#allocation4 + $0xa0] sm:$0xff]  ;;  %v987_v59 = vand.u32 4294901760, %v961_v42 }
  0x67   : > { %v990_v0 = vand.u32 4294901760, %v962_v45 }
  0x68   : > { %v6722_v9 = vsub.f32 %v961_v42, %v987_v59 }
  0x69   : > { %5423 = vmatpush3.bf16.msra.mxu1 %v5422_v3  ;;  %5495 = vmatpush3.bf16.msra.mxu0 %v5494_v62  ;;  %v963_v62 = vld [vmem:[#allocation4 + $0xa8] sm:$0xff]  ;;  %v996_v3 = vand.u32 4294901760, %v964_v63  ;;  %v6724_v11 = vpack.c.bf16 %v990_v0, %v987_v59  ;;  %v6726_v15 = vsub.f32 %v962_v45, %v990_v0 }
  0x6a   : > { %5424 = vmatprep.subr.bf16.mxu1 %v6310_v4  ;;  %5496 = vmatprep.subr.bf16.mxu0 %v6310_v4  ;;  %v993_v1 = vand.u32 4294901760, %v963_v62  ;;  %v1088_v59 = vand.u32 4294901760, %v6722_v9 }
  0x6c   : > { %v6728_v16 = vsub.f32 %v963_v62, %v993_v1  ;;  %v6743_v48 = vpack.c.bf16 %v996_v3, %v993_v1  ;;  %v1095_v62 = vand.u32 4294901760, %v6726_v15 }
  0x6d   : > { %5426 = vmatpush3.bf16.msra.mxu1 %v5425_v10  ;;  %5498 = vmatpush3.bf16.msra.mxu0 %v5497_v47  ;;  %v6716_v47 = vpack.c.bf16 %v984_v39, %v981_v58  ;;  %v968_v10 = vld [vmem:[#allocation4 + $0xd0] sm:$0xff] }
  0x6e   : > { %5427 = vmatprep.subr.bf16.mxu1 %v6310_v4  ;;  %5499 = vmatprep.subr.bf16.mxu0 %v6310_v4  ;;  %v1008_v24 = vand.u32 4294901760, %v968_v10  ;;  %v1096_v0 = vsub.f32 %v6726_v15, %v1095_v62 }
  0x70   : > { %v6740_v29 = vsub.f32 %v968_v10, %v1008_v24  ;;  %v1097_v5 = vand.u32 4294901760, %v1096_v0 }
  0x71   : > { %5429 = vmatpush3.bf16.msra.mxu1 %v5428_v20  ;;  %5501 = vmatpush3.bf16.msra.mxu0 %v5500_v17  ;;  %v6731_v17 = vsub.f32 %v964_v63, %v996_v3  ;;  %v1002_v20 = vand.u32 4294901760, %v966_v6 }
  0x72   : > { %5430 = vmatprep.subr.bf16.mxu1 %v6310_v4  ;;  %5502 = vmatprep.subr.bf16.mxu0 %v6310_v4 }
  0x75   : > { %5432 = vmatpush3.bf16.msra.mxu1 %v5431_v26  ;;  %5504 = vmatpush3.bf16.msra.mxu0 %v5503_v28  ;;  %v6736_v26 = vsub.f32 %v966_v6, %v1002_v20  ;;  %v6738_v28 = vsub.f32 %v967_v46, %v1005_v21  ;;  %v1102_v6 = vand.u32 4294901760, %v6728_v16  ;;  %v1109_v46 = vand.u32 4294901760, %v6731_v17 }
  0x76   : > { %5433 = vmatprep.subr.bf16.mxu1 %v6310_v4  ;;  %5505 = vmatprep.subr.bf16.mxu0 %v6310_v4 }
  0x79   : > { %5435 = vmatpush3.bf16.msra.mxu1 %v5434_v30  ;;  %5507 = vmatpush3.bf16.msra.mxu0 %v5506_v36  ;;  %v6748_v36 = vpack.c.bf16 %v1002_v20, %v999_v18  ;;  %v1103_v18 = vsub.f32 %v6728_v16, %v1102_v6  ;;  %v1110_v20 = vsub.f32 %v6731_v17, %v1109_v46 }
  0x7a   : > { %5436 = vmatprep.subr.bf16.mxu1 %v6310_v4  ;;  %5508 = vmatprep.subr.bf16.mxu0 %v6310_v4 }
  0x7c   : > { %4406 = vmatmul.mubr.f32.vlgmr.msra.gmra.mrb[0].mxu1 %v6480_v33  ;;  %4511 = vmatmul.mubr.f32.vlgmr.msra.gmra.mrb[0].mxu0 %v6480_v33 }
  0x7d   : > { %5438 = vmatpush3.bf16.msra.mxu1 %v5437_v49  ;;  %5510 = vmatpush3.bf16.msra.mxu0 %v6439_v13  ;;  %v5446_v13 = vpack.c.bf16 %v6548_v61, %v6545_v60  ;;  %v6699_v60 = vld [vmem:[#allocation4 + $0x2a8] ss:$0 sm:$0xff]  ;;  %v6752_v49 = vpack.c.bf16 %v1008_v24, %v1005_v21  ;;  %v1104_v21 = vand.u32 4294901760, %v1103_v18  ;;  %v1111_v24 = vand.u32 4294901760, %v1110_v20 }
  0x7e   : > { %5439 = vmatprep.subr.bf16.mxu1 %v6310_v4  ;;  %5511 = vmatprep.subr.bf16.mxu0 %v6310_v4 }
  0x7f   : > { %4440 = vmatprep.mubr.msk.f32.mxu1 %vm6311_vm1, %v7909_v12  ;;  %4545 = vmatprep.mubr.msk.f32.mxu0 %vm6311_vm1, %v7909_v12 }
  0x81   : > { %5441 = vmatpush3.bf16.msra.mxu1 %v5440_v54  ;;  %5513 = vmatpush3.bf16.msra.mxu0 %v6443_v14  ;;  %v5449_v14 = vpack.c.bf16 %v6569_v8, %v6566_v7  ;;  %v246_v7 = vld [vmem:[#allocation3] sm:$0xff]  ;;  %v969_v54 = vld [vmem:[#allocation4 + $0xd8] sm:$0xff] }
  0x82   : > { %5442 = vmatprep.subr.bf16.mxu1 %v6310_v4  ;;  %5514 = vmatprep.subr.bf16.mxu0 %v6310_v4 }
  0x85   : > { %5444 = vmatpush3.bf16.msra.mxu1 %v5443_v32  ;;  %5516 = vmatpush3.bf16.msra.mxu0 %v6455_v19  ;;  %v5452_v19 = vpack.c.bf16 %v6587_v23, %v6582_v22  ;;  %v970_v32 = vld [vmem:[#allocation4 + $0xe0] sm:$0xff] }
  0x86   : > { %5445 = vmatprep.subr.bf16.mxu1 %v6310_v4  ;;  %5517 = vmatprep.subr.bf16.mxu0 %v6310_v4 }
  0x89   : > { %5447 = vmatpush3.bf16.msra.mxu1 %v5446_v13  ;;  %5519 = vmatpush3.bf16.msra.mxu0 %v6468_v27  ;;  %v5455_v27 = vpack.c.bf16 %v6603_v37, %v6598_v31  ;;  %v1011_v13 = vand.u32 4294901760, %v969_v54 }
  0x8a   : > { %5448 = vmatprep.subr.bf16.mxu1 %v6310_v4  ;;  %5520 = vmatprep.subr.bf16.mxu0 %v6310_v4 }
  0x8d   : > { %5450 = vmatpush3.bf16.msra.mxu1 %v5449_v14  ;;  %5522 = vmatpush3.bf16.msra.mxu0 %v6486_v35  ;;  %v3817_v35 = vld [vmem:[#allocation4 + $0x80] ss:$0 sm:$0xff]  ;;  %v1014_v14 = vand.u32 4294901760, %v970_v32 }
  0x8e   : > { %5451 = vmatprep.subr.bf16.mxu1 %v6310_v4  ;;  %5523 = vmatprep.subr.bf16.mxu0 %v6310_v4 }
  0x91   : > { %5453 = vmatpush3.bf16.msra.mxu1 %v5452_v19  ;;  %5525 = vmatpush3.bf16.msra.mxu0 %v6510_v44  ;;  %v6757_v19 = vpack.c.bf16 %v1014_v14, %v1011_v13 }
  0x92   : > { %5454 = vmatprep.subr.bf16.mxu1 %v6310_v4  ;;  %5526 = vmatprep.subr.bf16.mxu0 %v6310_v4 }
  0x95   : > { %5456 = vmatpush3.bf16.msra.mxu1 %v5455_v27  ;;  %5528 = vmatpush3.bf16.msra.mxu0 %v6537_v56  ;;  %v971_v27 = vld [vmem:[#allocation4 + $0xe8] sm:$0xff] }
  0x96   : > { %5457 = vmatprep.subr.bf16.mxu1 %v6310_v4  ;;  %5529 = vmatprep.subr.bf16.mxu0 %v6310_v4 }
  0x99   : > { %5459 = vmatpush3.bf16.msra.mxu1 %v5458_v34  ;;  %5531 = vmatpush3.bf16.msra.mxu0 %v6560_v2  ;;  %v972_v34 = vld [vmem:[#allocation4 + $0xf0] sm:$0xff] }
  0x9a   : > { %5532 = vmatprep.subr.bf16.mxu1 %v6310_v4  ;;  %5676 = vmatprep.subr.bf16.mxu0 %v6310_v4 }
  0x9c   : > { %4441 = vmatmul.mubr.f32.vlgmr.msra.gmra.mrb[0].mxu1 %v6502_v43  ;;  %4546 = vmatmul.mubr.f32.vlgmr.msra.gmra.mrb[0].mxu0 %v6480_v33  ;;  %v6701_v43 = vld [vmem:[#allocation4 + $0x2a9] ss:$0 sm:$0xff] }
  0x9d   : > { %4580 = vmatprep.mubr.msk.f32.mxu1 %vm6311_vm1, %v7909_v12  ;;  %4790 = vmatprep.mubr.msk.f32.mxu0 %vm6311_vm1, %v7909_v12 }
  0x9e   : > { %5534 = vmatpush3.bf16.msra.mxu1 %v6716_v47 }
  0x9f   : > { %5535 = vmatprep.subr.bf16.mxu1 %v6310_v4 }
  0xa2   : > { %5537 = vmatpush3.bf16.msra.mxu1 %v6724_v11 }
  0xa3   : > { %5538 = vmatprep.subr.bf16.mxu1 %v6310_v4 }
  0xa6   : > { %5540 = vmatpush3.bf16.msra.mxu1 %v6743_v48 }
  0xa7   : > { %5541 = vmatprep.subr.bf16.mxu1 %v6310_v4 }
  0xaa   : > { %5543 = vmatpush3.bf16.msra.mxu1 %v6748_v36 }
  0xab   : > { %5544 = vmatprep.subr.bf16.mxu1 %v6310_v4 }
  0xae   : > { %5546 = vmatpush3.bf16.msra.mxu1 %v6752_v49 }
  0xaf   : > { %5547 = vmatprep.subr.bf16.mxu1 %v6310_v4 }
  0xb2   : > { %5549 = vmatpush3.bf16.msra.mxu1 %v6757_v19 }
  0xb3   : > { %5550 = vmatprep.subr.bf16.mxu1 %v6310_v4 }
 0x16f   : > { %v610_v40 = vpop.f32.mrb[0].mxu1  ;;  %v905_v41 = vpop.f32.mrb[0].mxu0 }
 0x170   : > { %v6108_v44 = vadd.f32 %v3817_v35, %v610_v40  ;;  %v4442_v50 = vpop.f32.mrb[1].mxu1  ;;  %v4547_v51 = vpop.f32.mrb[1].mxu0  ;;  %v1017_v35 = vand.u32 4294901760, %v971_v27  ;;  %v1020_v40 = vand.u32 4294901760, %v972_v34 }
 0x171   : > { %v974_v50 = vld [vmem:[#allocation4 + $0x100] sm:$0xff]  ;;  %v6763_v51 = vsub.f32 %v969_v54, %v1011_v13  ;;  %v1123_v54 = vand.u32 4294901760, %v6736_v26 }
 0x172   : > { %v6109_v56 = vadd.f32 %v6108_v44, %v905_v41  ;;  %v6761_v41 = vpack.c.bf16 %v1020_v40, %v1017_v35  ;;  %v973_v44 = vld [vmem:[#allocation4 + $0xf8] sm:$0xff] }
 0x174   : > { %6224 = vtanh.f32 %v6109_v56  ;;  %v6765_v56 = vsub.f32 %v970_v32, %v1014_v14  ;;  %5552 = vmatpush3.bf16.msra.mxu1 %v6761_v41  ;;  %v5563_v32 = vpack.c.bf16 %v1111_v24, %v1104_v21  ;;  %v1124_v14 = vsub.f32 %v6736_v26, %v1123_v54 }
 0x175   : > { %5553 = vmatprep.subr.bf16.mxu1 %v6310_v4 }
 0x17e   : > { %v6225_v61 = vpop.eup %6224 }
 0x17f   : > { %v914_v33 = vmul.f32 %v6225_v61, %v6699_v60  ;;  %v6768_v61 = vsub.f32 %v971_v27, %v1017_v35  ;;  %v1130_v35 = vand.u32 4294901760, %v6738_v28 }
 0x181   : > { %v6705_v2 = vadd.f32 %v6701_v43, %v914_v33  ;;  %v6770_v33 = vsub.f32 %v972_v34, %v1020_v40  ;;  %v1125_v34 = vand.u32 4294901760, %v1124_v14  ;;  %v7875_v40 = vand.u32 4294901760, %v6740_v29 }
 0x183   : > { %926 = vrot.lane.b32.xlu0 %v6705_v2, %s6313_s13 }
 0x187   : > { %921 = vrot.lane.b32.xlu0 %v246_v7, %s6314_s8  ;;  %v1023_v7 = vand.u32 4294901760, %v973_v44 }
 0x189   : > { %v6777_v57 = vsub.f32 %v973_v44, %v1023_v7 }
 0x18b   : > { %v7870_v14 = vand.u32 4294901760, %v6777_v57 }
 0x1f5   : > { %v927_v8 = vpop.permute.xlu0 %926 }
 0x1f6   : > { %v929_v22 = vmul.f32 %v927_v8, %v6705_v2  ;;  %v1026_v8 = vand.u32 4294901760, %v974_v50 }
 0x1f8   : > { %931 = vrot.lane.b32.xlu1 %v929_v22, %s6314_s8  ;;  %v1074_v22 = vand.u32 4294901760, %v6718_v52  ;;  %v6779_v38 = vsub.f32 %v974_v50, %v1026_v8  ;;  %v1131_v50 = vsub.f32 %v6738_v28, %v1130_v35 }
 0x1f9   : > { %v922_v23 = vpop.permute.xlu0 %921 }
 0x1fa   : > { %v924_v31 = vmul.f32 %v922_v23, %v6705_v2  ;;  %v1081_v23 = vand.u32 4294901760, %v6720_v53  ;;  %v1075_v42 = vsub.f32 %v6718_v52, %v1074_v22 }
 0x1fc   : > { %v1082_v39 = vsub.f32 %v6720_v53, %v1081_v23  ;;  %v1076_v45 = vand.u32 4294901760, %v1075_v42  ;;  %v7874_v42 = vand.u32 4294901760, %v6763_v51 }
 0x1fe   : > { %v1083_v63 = vand.u32 4294901760, %v1082_v39 }
 0x200   : > { %v6799_v1 = vpack.c.bf16 %v1083_v63, %v1076_v45  ;;  %v1145_v45 = vsub.f32 %v6763_v51, %v7874_v42 }
 0x26a   : > { %v932_v37 = vpop.permute.xlu1 %931 }
 0x26b   : > { %v6713_v55 = vadd.f32 %v932_v37, %v924_v31  ;;  %v6775_v37 = vpack.c.bf16 %v1026_v8, %v1023_v7  ;;  %v1138_v7 = vsub.f32 %v6740_v29, %v7875_v40  ;;  %v1132_v8 = vand.u32 4294901760, %v1131_v50 }
 0x26c   : > { %v1173_v50 = vsub.f32 %v6777_v57, %v7870_v14 }
 0x26d   : > { %6226 = vtanh.f32 %v6713_v55  ;;  %5555 = vmatpush3.bf16.msra.mxu1 %v6775_v37 }
 0x26e   : > { %5556 = vmatprep.subr.bf16.mxu1 %v6310_v4 }
 0x277   : > { %v6227_v30 = vpop.eup %6226 }
 0x278   : > { %937 = vrot.lane.b32.xlu1 %v6227_v30, %s6313_s13  ;;  %v1116_v30 = vand.u32 4294901760, %v6734_v25 }
 0x27a   : > { %v1117_v13 = vsub.f32 %v6734_v25, %v1116_v30 }
 0x27c   : > { %v1118_v27 = vand.u32 4294901760, %v1117_v13 }
 0x27e   : > { %v5566_v44 = vpack.c.bf16 %v1125_v34, %v1118_v27  ;;  %v7869_v27 = vand.u32 4294901760, %v6779_v38 }
 0x2ea   : > { %v938_v31 = vpop.permute.xlu1 %937 }
 0x2eb   : > { %v940_v58 = vmul.f32 %v938_v31, %v6705_v2  ;;  %v1089_v2 = vsub.f32 %v6722_v9, %v1088_v59  ;;  %v1139_v31 = vand.u32 4294901760, %v1138_v7  ;;  %v1180_v7 = vsub.f32 %v6779_v38, %v7869_v27 }
 0x2ed   : > { %942 = vrot.lane.b32.xlu0 %v940_v58, %s6314_s8  ;;  %v1090_v3 = vand.u32 4294901760, %v1089_v2  ;;  %v7873_v58 = vand.u32 4294901760, %v6765_v56  ;;  %v5569_v39 = vpack.c.bf16 %v1139_v31, %v1132_v8  ;;  %v1146_v2 = vand.u32 4294901760, %v1145_v45 }
 0x2ee   : > { %v1174_v8 = vand.u32 4294901760, %v1173_v50  ;;  %v1181_v31 = vand.u32 4294901760, %v1180_v7  ;;  %v5602_v50 = vpack.c.bf16 %v6779_v38, %v6777_v57 }
 0x2ef   : > { %v6803_v10 = vpack.c.bf16 %v1097_v5, %v1090_v3  ;;  %v1152_v63 = vsub.f32 %v6765_v56, %v7873_v58  ;;  %v7872_v3 = vand.u32 4294901760, %v6768_v61  ;;  %v7871_v5 = vand.u32 4294901760, %v6770_v33 }
 0x2f0   : > { %v5578_v45 = vpack.c.bf16 %v1181_v31, %v1174_v8  ;;  %v955_v8 = vld [vmem:[#allocation2 + $0x8] sm:$0xff] }
 0x2f1   : > { %v1153_v0 = vand.u32 4294901760, %v1152_v63  ;;  %v1159_v20 = vsub.f32 %v6768_v61, %v7872_v3  ;;  %v1166_v21 = vsub.f32 %v6770_v33, %v7871_v5  ;;  %v5581_v63 = vpack.c.bf16 %v6720_v53, %v6718_v52 }
 0x2f2   : > { %v5635_v52 = vpack.c.bf16 %v1109_v46, %v1102_v6  ;;  %v5638_v53 = vpack.c.bf16 %v1123_v54, %v1116_v30  ;;  %v1666_v46 = vld [vmem:[#allocation4 + $0x128] sm:$0xff]  ;;  %v1667_v54 = vld [vmem:[#allocation4 + $0x130] sm:$0xff] }
 0x2f3   : > { %v5572_v18 = vpack.c.bf16 %v1153_v0, %v1146_v2  ;;  %v1160_v24 = vand.u32 4294901760, %v1159_v20  ;;  %v1167_v13 = vand.u32 4294901760, %v1166_v21  ;;  %v5584_v2 = vpack.c.bf16 %v6726_v15, %v6722_v9 }
 0x2f4   : > { %v5587_v0 = vpack.c.bf16 %v6731_v17, %v6728_v16  ;;  %v5590_v20 = vpack.c.bf16 %v6736_v26, %v6734_v25  ;;  %v5593_v21 = vpack.c.bf16 %v6740_v29, %v6738_v28  ;;  %v7924_v9 = vand.u32 4294901760, %v6740_v29 }
 0x2f5   : > { %v5575_v34 = vpack.c.bf16 %v1167_v13, %v1160_v24  ;;  %v5596_v24 = vpack.c.bf16 %v6765_v56, %v6763_v51  ;;  %v5599_v13 = vpack.c.bf16 %v6770_v33, %v6768_v61  ;;  %v7925_v16 = vand.u32 4294901760, %v6763_v51 }
 0x2f6   : > { %v5641_v15 = vpack.c.bf16 %v7924_v9, %v1130_v35  ;;  %v7926_v17 = vand.u32 4294901760, %v6765_v56  ;;  %v7927_v25 = vand.u32 4294901760, %v6768_v61  ;;  %v7928_v26 = vand.u32 4294901760, %v6770_v33  ;;  %v1668_v35 = vld [vmem:[#allocation4 + $0x138] sm:$0xff]  ;;  %v1673_v9 = vld [vmem:[#allocation4 + $0x160] sm:$0xff] }
 0x2f7   : > { %v7929_v28 = vand.u32 4294901760, %v6777_v57  ;;  %v7930_v29 = vand.u32 4294901760, %v6779_v38  ;;  %v1664_v38 = vld [vmem:[#allocation4 + $0x118] sm:$0xff] }
 0x2f8   : > { %v1688_v6 = vand.u32 4294901760, %v1664_v38 }
 0x35f   : > { %v943_v7 = vpop.permute.xlu0 %942 }
 0x360   : > { %v6868_v31 = vsel %vm945_vm2, %v943_v7, 0.0 }
 0x361   : > { %v947_v27 = vmax.f32 %v6868_v31, 0.0  ;;  %948 = vst [vmem:[#allocation2] sm:$0xff] %v6868_v31  ;;  %3662 = vst [vmem:[%s6421_s4] sm:$0xff] (!%p3824_p9), %v6868_v31 }
 0x363   : > { %v956_v14 = vadd.f32 %v955_v8, %v947_v27  ;;  %3651 = vst [vmem:[%s6426_s7] sm:$0xff] %v947_v27 }
 0x365   : > { %v6873_v5 = vand.u32 4294901760, %v956_v14 }
 0x367   : > { %v1062_v3 = vsub.f32 %v956_v14, %v6873_v5  ;;  %v6998_v14 = vsub.f32 %v1664_v38, %v1688_v6 }
 0x369   : > { %v1063_v58 = vand.u32 4294901760, %v1062_v3 }
 0x36b   : > { %v1064_v42 = vsub.f32 %v1062_v3, %v1063_v58 }
 0x36d   : > { %v1065_v40 = vand.u32 4294901760, %v1064_v42  ;;  %v1700_v42 = vand.u32 4294901760, %v1668_v35 }
 0x36f   : > { %4581 = vmatmul.mubr.f32.vlgmr.msra.gmra.mrb[2].mxu1 %v1065_v40  ;;  %v1694_v40 = vand.u32 4294901760, %v1666_v46 }
 0x370   : > { %5558 = vmatpush3.bf16.msra.mxu1 %v6799_v1  ;;  %4615 = vmatprep.mubr.msk.f32.mxu1 %vm6311_vm1, %v7909_v12  ;;  %v958_v1 = vld [vmem:[#allocation3 + $0x8] sm:$0xff] }
 0x371   : > { %5559 = vmatprep.subr.bf16.mxu1 %v6310_v4  ;;  %1625 = vrot.lane.b32.xlu0 %v958_v1, %s6314_s8 }
 0x374   : > { %5561 = vmatpush3.bf16.msra.mxu1 %v6803_v10  ;;  %v5629_v10 = vpack.c.bf16 %v1081_v23, %v1074_v22  ;;  %v5644_v22 = vpack.c.bf16 %v7926_v17, %v7925_v16  ;;  %v5647_v23 = vpack.c.bf16 %v7928_v26, %v7927_v25  ;;  %v1715_v16 = vand.u32 4294901760, %v1673_v9  ;;  %v1675_v25 = vld [vmem:[#allocation4 + $0x170] sm:$0xff]  ;;  %v1676_v26 = vld [vmem:[#allocation4 + $0x178] sm:$0xff] }
 0x375   : > { %5562 = vmatprep.subr.bf16.mxu1 %v6310_v4 }
 0x378   : > { %5564 = vmatpush3.bf16.msra.mxu1 %v5563_v32  ;;  %v5632_v32 = vpack.c.bf16 %v1095_v62, %v1088_v59  ;;  %v5650_v59 = vpack.c.bf16 %v7930_v29, %v7929_v28  ;;  %v1724_v28 = vand.u32 4294901760, %v1676_v26 }
 0x379   : > { %5565 = vmatprep.subr.bf16.mxu1 %v6310_v4 }
 0x37c   : > { %5567 = vmatpush3.bf16.msra.mxu1 %v5566_v44  ;;  %v1697_v44 = vand.u32 4294901760, %v1667_v54 }
 0x37d   : > { %5568 = vmatprep.subr.bf16.mxu1 %v6310_v4 }
 0x380   : > { %5570 = vmatpush3.bf16.msra.mxu1 %v5569_v39  ;;  %v1670_v39 = vld [vmem:[#allocation4 + $0x148] sm:$0xff] }
 0x381   : > { %5571 = vmatprep.subr.bf16.mxu1 %v6310_v4 }
 0x384   : > { %5573 = vmatpush3.bf16.msra.mxu1 %v5572_v18 }
 0x385   : > { %5574 = vmatprep.subr.bf16.mxu1 %v6310_v4 }
 0x388   : > { %5576 = vmatpush3.bf16.msra.mxu1 %v5575_v34  ;;  %v1672_v34 = vld [vmem:[#allocation4 + $0x158] sm:$0xff] }
 0x389   : > { %5577 = vmatprep.subr.bf16.mxu1 %v6310_v4 }
 0x38c   : > { %5579 = vmatpush3.bf16.msra.mxu1 %v5578_v45 }
 0x38d   : > { %5580 = vmatprep.subr.bf16.mxu1 %v6310_v4 }
 0x38f   : > { %4616 = vmatmul.mubr.f32.vlgmr.msra.gmra.mrb[2].mxu1 %v6873_v5 }
 0x390   : > { %5582 = vmatpush3.bf16.msra.mxu1 %v5581_v63  ;;  %4650 = vmatprep.mubr.msk.f32.mxu1 %vm6311_vm1, %v7909_v12  ;;  %v7004_v63 = vsub.f32 %v1666_v46, %v1694_v40 }
 0x391   : > { %5583 = vmatprep.subr.bf16.mxu1 %v6310_v4 }
 0x394   : > { %5585 = vmatpush3.bf16.msra.mxu1 %v5584_v2  ;;  %v7006_v2 = vsub.f32 %v1667_v54, %v1697_v44 }
 0x395   : > { %5586 = vmatprep.subr.bf16.mxu1 %v6310_v4 }
 0x398   : > { %5588 = vmatpush3.bf16.msra.mxu1 %v5587_v0  ;;  %v7009_v0 = vsub.f32 %v1668_v35, %v1700_v42 }
 0x399   : > { %5589 = vmatprep.subr.bf16.mxu1 %v6310_v4 }
 0x39c   : > { %5591 = vmatpush3.bf16.msra.mxu1 %v5590_v20 }
 0x39d   : > { %5592 = vmatprep.subr.bf16.mxu1 %v6310_v4 }
 0x3a0   : > { %5594 = vmatpush3.bf16.msra.mxu1 %v5593_v21  ;;  %v1706_v21 = vand.u32 4294901760, %v1670_v39 }
 0x3a1   : > { %5595 = vmatprep.subr.bf16.mxu1 %v6310_v4 }
 0x3a2   : > { %v7015_v8 = vsub.f32 %v1670_v39, %v1706_v21 }
 0x3a4   : > { %5597 = vmatpush3.bf16.msra.mxu1 %v5596_v24 }
 0x3a5   : > { %5598 = vmatprep.subr.bf16.mxu1 %v6310_v4 }
 0x3a8   : > { %5600 = vmatpush3.bf16.msra.mxu1 %v5599_v13 }
 0x3a9   : > { %5601 = vmatprep.subr.bf16.mxu1 %v6310_v4 }
 0x3ac   : > { %5603 = vmatpush3.bf16.msra.mxu1 %v5602_v50  ;;  %v1712_v50 = vand.u32 4294901760, %v1672_v34 }
 0x3ad   : > { %5604 = vmatprep.subr.bf16.mxu1 %v6310_v4 }
 0x3af   : > { %4651 = vmatmul.mubr.f32.vlgmr.msra.gmra.mrb[2].mxu1 %v1062_v3  ;;  %v1671_v3 = vld [vmem:[#allocation4 + $0x150] sm:$0xff] }
 0x3b0   : > { %5606 = vmatpush3.bf16.msra.mxu1 %v6716_v47  ;;  %4685 = vmatprep.mubr.msk.f32.mxu1 %vm6311_vm1, %v7909_v12  ;;  %v1709_v24 = vand.u32 4294901760, %v1671_v3 }
 0x3b1   : > { %5607 = vmatprep.subr.bf16.mxu1 %v6310_v4 }
 0x3b2   : > { %v7017_v1 = vsub.f32 %v1671_v3, %v1709_v24  ;;  %v7886_v3 = vand.u32 4294901760, %v7009_v0 }
 0x3b4   : > { %5609 = vmatpush3.bf16.msra.mxu1 %v6724_v11 }
 0x3b5   : > { %5610 = vmatprep.subr.bf16.mxu1 %v6310_v4 }
 0x3b8   : > { %5612 = vmatpush3.bf16.msra.mxu1 %v6743_v48 }
 0x3b9   : > { %5613 = vmatprep.subr.bf16.mxu1 %v6310_v4 }
 0x3bc   : > { %5615 = vmatpush3.bf16.msra.mxu1 %v6748_v36 }
 0x3bd   : > { %5616 = vmatprep.subr.bf16.mxu1 %v6310_v4 }
 0x3c0   : > { %5618 = vmatpush3.bf16.msra.mxu1 %v6752_v49 }
 0x3c1   : > { %5619 = vmatprep.subr.bf16.mxu1 %v6310_v4 }
 0x3c4   : > { %5621 = vmatpush3.bf16.msra.mxu1 %v6757_v19 }
 0x3c5   : > { %5622 = vmatprep.subr.bf16.mxu1 %v6310_v4 }
 0x3c8   : > { %5624 = vmatpush3.bf16.msra.mxu1 %v6761_v41 }
 0x3c9   : > { %5625 = vmatprep.subr.bf16.mxu1 %v6310_v4 }
 0x3cc   : > { %5627 = vmatpush3.bf16.msra.mxu1 %v6775_v37 }
 0x3cd   : > { %5628 = vmatprep.subr.bf16.mxu1 %v6310_v4 }
 0x3cf   : > { %4686 = vmatmul.mubr.f32.vlgmr.msra.gmra.mrb[2].mxu1 %v1063_v58  ;;  %v1669_v58 = vld [vmem:[#allocation4 + $0x140] sm:$0xff] }
 0x3d0   : > { %5630 = vmatpush3.bf16.msra.mxu1 %v5629_v10  ;;  %4720 = vmatprep.mubr.msk.f32.mxu1 %vm6311_vm1, %v7909_v12  ;;  %v1703_v20 = vand.u32 4294901760, %v1669_v58  ;;  %v7019_v10 = vsub.f32 %v1672_v34, %v1712_v50 }
 0x3d1   : > { %5631 = vmatprep.subr.bf16.mxu1 %v6310_v4 }
 0x3d2   : > { %v7013_v7 = vsub.f32 %v1669_v58, %v1703_v20 }
 0x3d4   : > { %5633 = vmatpush3.bf16.msra.mxu1 %v5632_v32  ;;  %v7022_v32 = vpack.c.bf16 %v1700_v42, %v1697_v44 }
 0x3d5   : > { %5634 = vmatprep.subr.bf16.mxu1 %v6310_v4 }
 0x3d8   : > { %5636 = vmatpush3.bf16.msra.mxu1 %v5635_v52  ;;  %v7026_v52 = vpack.c.bf16 %v1706_v21, %v1703_v20  ;;  %v1814_v21 = vsub.f32 %v7009_v0, %v7886_v3 }
 0x3d9   : > { %5637 = vmatprep.subr.bf16.mxu1 %v6310_v4 }
 0x3dc   : > { %5639 = vmatpush3.bf16.msra.mxu1 %v5638_v53  ;;  %v7030_v53 = vpack.c.bf16 %v1712_v50, %v1709_v24  ;;  %v7885_v50 = vand.u32 4294901760, %v7013_v7 }
 0x3dd   : > { %5640 = vmatprep.subr.bf16.mxu1 %v6310_v4 }
 0x3e0   : > { %5642 = vmatpush3.bf16.msra.mxu1 %v5641_v15  ;;  %v1674_v15 = vld [vmem:[#allocation4 + $0x168] sm:$0xff] }
 0x3e1   : > { %5643 = vmatprep.subr.bf16.mxu1 %v6310_v4  ;;  %v1718_v17 = vand.u32 4294901760, %v1674_v15 }
 0x3e3   : > { %v1626_v61 = vpop.permute.xlu0 %1625 }
 0x3e4   : > { %5645 = vmatpush3.bf16.msra.mxu1 %v5644_v22  ;;  %v7035_v22 = vpack.c.bf16 %v1718_v17, %v1715_v16 }
 0x3e5   : > { %5646 = vmatprep.subr.bf16.mxu1 %v6310_v4 }
 0x3e8   : > { %5648 = vmatpush3.bf16.msra.mxu1 %v5647_v23  ;;  %v1721_v23 = vand.u32 4294901760, %v1675_v25 }
 0x3e9   : > { %5649 = vmatprep.subr.bf16.mxu1 %v6310_v4 }
 0x3ea   : > { %v7039_v29 = vpack.c.bf16 %v1724_v28, %v1721_v23 }
 0x3ec   : > { %5651 = vmatpush3.bf16.msra.mxu1 %v5650_v59  ;;  %v1677_v59 = vld [vmem:[#allocation4 + $0x180] sm:$0xff] }
 0x3ed   : > { %5652 = vmatprep.subr.bf16.mxu1 %v6310_v4 }
 0x3ef   : > { %4721 = vmatmul.mubr.f32.vlgmr.msra.gmra.mrb[2].mxu1 %v6873_v5 }
 0x3f0   : > { %5654 = vmatpush3.bf16.msra.mxu1 %v6716_v47  ;;  %4755 = vmatprep.mubr.msk.f32.mxu1 %vm6311_vm1, %v7909_v12  ;;  %v3820_v47 = vld [vmem:[#allocation4 + $0x108] ss:$0 sm:$0xff] }
 0x3f1   : > { %5655 = vmatprep.subr.bf16.mxu1 %v6310_v4 }
 0x3f4   : > { %5657 = vmatpush3.bf16.msra.mxu1 %v6724_v11 }
 0x3f5   : > { %5658 = vmatprep.subr.bf16.mxu1 %v6310_v4 }
 0x3f8   : > { %5660 = vmatpush3.bf16.msra.mxu1 %v6743_v48 }
 0x3f9   : > { %5661 = vmatprep.subr.bf16.mxu1 %v6310_v4 }
 0x3fc   : > { %5663 = vmatpush3.bf16.msra.mxu1 %v6748_v36 }
 0x3fd   : > { %5664 = vmatprep.subr.bf16.mxu1 %v6310_v4 }
 0x400   : > { %5666 = vmatpush3.bf16.msra.mxu1 %v6752_v49 }
 0x401   : > { %5667 = vmatprep.subr.bf16.mxu1 %v6310_v4 }
 0x404   : > { %5669 = vmatpush3.bf16.msra.mxu1 %v6757_v19 }
 0x405   : > { %5670 = vmatprep.subr.bf16.mxu1 %v6310_v4 }
 0x408   : > { %5672 = vmatpush3.bf16.msra.mxu1 %v6761_v41 }
 0x409   : > { %5673 = vmatprep.subr.bf16.mxu1 %v6310_v4 }
 0x40c   : > { %5675 = vmatpush3.bf16.msra.mxu1 %v6775_v37 }
 0x40d   : > { %5820 = vmatprep.subr.bf16.mxu1 %v6310_v4 }
 0x40f   : > { %4756 = vmatmul.mubr.f32.vlgmr.msra.gmra.mrb[2].mxu1 %v6873_v5 }
 0x410   : > { %5000 = vmatprep.mubr.msk.f32.mxu1 %vm6311_vm1, %v7909_v12 }
 0x4e2   : > { %v1617_v11 = vpop.f32.mrb[2].mxu1 }
 0x4e3   : > { %v6110_v48 = vadd.f32 %v3820_v47, %v1617_v11  ;;  %v4757_v36 = vpop.f32.mrb[3].mxu1  ;;  %v1678_v47 = vld [vmem:[#allocation4 + $0x188] sm:$0xff]  ;;  %v1727_v11 = vand.u32 4294901760, %v1677_v59 }
 0x4e5   : > { %6228 = vtanh.f32 %v6110_v48  ;;  %v1730_v48 = vand.u32 4294901760, %v1678_v47 }
 0x4ef   : > { %v6229_v49 = vpop.eup %6228 }
 0x4f0   : > { %v1622_v19 = vmul.f32 %v6229_v49, %v6699_v60  ;;  %v1663_v60 = vld [vmem:[#allocation4 + $0x110] sm:$0xff]  ;;  %v7891_v49 = vand.u32 4294901760, %v6998_v14 }
 0x4f1   : > { %v1685_v62 = vand.u32 4294901760, %v1663_v60 }
 0x4f2   : > { %v6984_v41 = vadd.f32 %v6701_v43, %v1622_v19  ;;  %v1665_v43 = vld [vmem:[#allocation4 + $0x120] sm:$0xff]  ;;  %v7045_v19 = vsub.f32 %v1673_v9, %v1715_v16  ;;  %v7884_v9 = vand.u32 4294901760, %v7015_v8  ;;  %v1821_v16 = vsub.f32 %v7013_v7, %v7885_v50 }
 0x4f3   : > { %v1691_v30 = vand.u32 4294901760, %v1665_v43  ;;  %v6994_v5 = vpack.c.bf16 %v1688_v6, %v1685_v62  ;;  %v6996_v18 = vsub.f32 %v1663_v60, %v1685_v62  ;;  %v7057_v60 = vsub.f32 %v1678_v47, %v1730_v48 }
 0x4f4   : > { %1630 = vrot.lane.b32.xlu1 %v6984_v41, %s6313_s13  ;;  %v1628_v33 = vmul.f32 %v1626_v61, %v6984_v41  ;;  %v7051_v61 = vsub.f32 %v1676_v26, %v1724_v28  ;;  %v7882_v26 = vand.u32 4294901760, %v7019_v10 }
 0x4f5   : > { %v7000_v27 = vsub.f32 %v1665_v43, %v1691_v30  ;;  %v7002_v45 = vpack.c.bf16 %v1694_v40, %v1691_v30  ;;  %5678 = vmatpush3.bf16.msra.mxu0 %v6994_v5  ;;  %v1778_v36 = vand.u32 4294901760, %v6996_v18  ;;  %v1786_v43 = vsub.f32 %v6998_v14, %v7891_v49 }
 0x4f6   : > { %5679 = vmatprep.subr.bf16.mxu0 %v6310_v4  ;;  %v7888_v30 = vand.u32 4294901760, %v7004_v63 }
 0x4f7   : > { %v1779_v38 = vsub.f32 %v6996_v18, %v1778_v36  ;;  %v7889_v46 = vand.u32 4294901760, %v7000_v27  ;;  %v1787_v35 = vand.u32 4294901760, %v1786_v43 }
 0x4f8   : > { %v1800_v44 = vsub.f32 %v7004_v63, %v7888_v30 }
 0x4f9   : > { %5681 = vmatpush3.bf16.msra.mxu0 %v7002_v45  ;;  %v1780_v6 = vand.u32 4294901760, %v1779_v38  ;;  %v1793_v40 = vsub.f32 %v7000_v27, %v7889_v46 }
 0x4fa   : > { %5682 = vmatprep.subr.bf16.mxu0 %v6310_v4  ;;  %v1801_v39 = vand.u32 4294901760, %v1800_v44  ;;  %v7878_v44 = vand.u32 4294901760, %v7051_v61 }
 0x4fb   : > { %v7078_v42 = vpack.c.bf16 %v1787_v35, %v1780_v6  ;;  %v1794_v58 = vand.u32 4294901760, %v1793_v40 }
 0x4fd   : > { %5684 = vmatpush3.bf16.msra.mxu0 %v7022_v32  ;;  %v7082_v34 = vpack.c.bf16 %v1801_v39, %v1794_v58 }
 0x4fe   : > { %5685 = vmatprep.subr.bf16.mxu0 %v6310_v4 }
 0x501   : > { %5687 = vmatpush3.bf16.msra.mxu0 %v7026_v52 }
 0x502   : > { %5688 = vmatprep.subr.bf16.mxu0 %v6310_v4 }
 0x505   : > { %5690 = vmatpush3.bf16.msra.mxu0 %v7030_v53 }
 0x506   : > { %5691 = vmatprep.subr.bf16.mxu0 %v6310_v4 }
 0x509   : > { %5693 = vmatpush3.bf16.msra.mxu0 %v7035_v22 }
 0x50a   : > { %5694 = vmatprep.subr.bf16.mxu0 %v6310_v4 }
 0x50d   : > { %5696 = vmatpush3.bf16.msra.mxu0 %v7039_v29 }
 0x50e   : > { %5697 = vmatprep.subr.bf16.mxu0 %v6310_v4 }
 0x566   : > { %v1631_v51 = vpop.permute.xlu1 %1630 }
 0x567   : > { %v1633_v56 = vmul.f32 %v1631_v51, %v6984_v41  ;;  %v7047_v51 = vsub.f32 %v1674_v15, %v1718_v17  ;;  %v1828_v17 = vsub.f32 %v7015_v8, %v7884_v9 }
 0x569   : > { %1635 = vrot.lane.b32.xlu1 %v1633_v56, %s6314_s8  ;;  %v7049_v56 = vsub.f32 %v1675_v25, %v1721_v23  ;;  %v1822_v25 = vand.u32 4294901760, %v1821_v16  ;;  %v7880_v38 = vand.u32 4294901760, %v7047_v51  ;;  %v7876_v16 = vand.u32 4294901760, %v7057_v60 }
 0x56b   : > { %v1856_v6 = vsub.f32 %v7047_v51, %v7880_v38  ;;  %v7879_v40 = vand.u32 4294901760, %v7049_v56 }
 0x56d   : > { %v1857_v35 = vand.u32 4294901760, %v1856_v6  ;;  %v1863_v39 = vsub.f32 %v7049_v56, %v7879_v40  ;;  %v5731_v6 = vpack.c.bf16 %v7009_v0, %v7006_v2 }
 0x5db   : > { %v1636_v37 = vpop.permute.xlu1 %1635 }
 0x5dc   : > { %v6991_v57 = vadd.f32 %v1636_v37, %v1628_v33  ;;  %v7053_v33 = vpack.c.bf16 %v1730_v48, %v1727_v11  ;;  %v7055_v37 = vsub.f32 %v1677_v59, %v1727_v11  ;;  %v1842_v59 = vsub.f32 %v7019_v10, %v7882_v26  ;;  %v2332_v26 = vld [vmem:[#allocation4 + $0x1d0] sm:$0xff] }
 0x5dd   : > { %v7881_v48 = vand.u32 4294901760, %v7045_v19 }
 0x5de   : > { %6230 = vtanh.f32 %v6991_v57  ;;  %5699 = vmatpush3.bf16.msra.mxu0 %v7053_v33  ;;  %v1843_v11 = vand.u32 4294901760, %v1842_v59 }
 0x5df   : > { %5700 = vmatprep.subr.bf16.mxu0 %v6310_v4 }
 0x5e8   : > { %v6231_v13 = vpop.eup %6230 }
 0x5e9   : > { %1641 = vrot.lane.b32.xlu0 %v6231_v13, %s6313_s13  ;;  %v1815_v13 = vand.u32 4294901760, %v1814_v21  ;;  %v1864_v21 = vand.u32 4294901760, %v1863_v39  ;;  %v5740_v39 = vpack.c.bf16 %v7047_v51, %v7045_v19 }
 0x65b   : > { %v1642_v62 = vpop.permute.xlu0 %1641 }
 0x65c   : > { %v1644_v54 = vmul.f32 %v1642_v62, %v6984_v41  ;;  %v7887_v41 = vand.u32 4294901760, %v7006_v2  ;;  %v1849_v62 = vsub.f32 %v7045_v19, %v7881_v48  ;;  %v2331_v48 = vld [vmem:[#allocation4 + $0x1c8] sm:$0xff] }
 0x65e   : > { %1651 = vrot.lane.b32.xlu0 %v1644_v54, %s6313_s13  ;;  %1646 = vrot.lane.b32.xlu1 %v1644_v54, %s6314_s8  ;;  %v1807_v20 = vsub.f32 %v7006_v2, %v7887_v41  ;;  %v1850_v54 = vand.u32 4294901760, %v1849_v62  ;;  %v5728_v62 = vpack.c.bf16 %v7004_v63, %v7000_v27  ;;  %v2334_v41 = vld [vmem:[#allocation4 + $0x1e0] sm:$0xff] }
 0x660   : > { %v1808_v24 = vand.u32 4294901760, %v1807_v20  ;;  %v5716_v58 = vpack.c.bf16 %v1857_v35, %v1850_v54  ;;  %v1870_v20 = vsub.f32 %v7051_v61, %v7878_v44  ;;  %v5734_v54 = vpack.c.bf16 %v7015_v8, %v7013_v7 }
 0x661   : > { %v5737_v35 = vpack.c.bf16 %v7019_v10, %v7017_v1 }
 0x662   : > { %1659 = vrot.lane.b32.xlu0 %v6991_v57, %s6315_s9  ;;  %950 = vrot.lane.b32.xlu1 %v6713_v55, %s6315_s9  ;;  %v7094_v15 = vpack.c.bf16 %v1815_v13, %v1808_v24  ;;  %v1829_v57 = vand.u32 4294901760, %v1828_v17  ;;  %v7883_v55 = vand.u32 4294901760, %v7017_v1  ;;  %v1871_v24 = vand.u32 4294901760, %v1870_v20 }
 0x663   : > { %v7877_v13 = vand.u32 4294901760, %v7055_v37  ;;  %v5743_v20 = vpack.c.bf16 %v7051_v61, %v7049_v56 }
 0x664   : > { %v5710_v23 = vpack.c.bf16 %v1829_v57, %v1822_v25  ;;  %v1835_v28 = vsub.f32 %v7017_v1, %v7883_v55  ;;  %v5719_v17 = vpack.c.bf16 %v1871_v24, %v1864_v21  ;;  %v1884_v57 = vsub.f32 %v7057_v60, %v7876_v16  ;;  %v2333_v55 = vld [vmem:[#allocation4 + $0x1d8] sm:$0xff] }
 0x665   : > { %v1877_v25 = vsub.f32 %v7055_v37, %v7877_v13  ;;  %v5746_v21 = vpack.c.bf16 %v7057_v60, %v7055_v37 }
 0x666   : > { %v1836_v47 = vand.u32 4294901760, %v1835_v28  ;;  %v1885_v59 = vand.u32 4294901760, %v1884_v57 }
 0x667   : > { %v1878_v28 = vand.u32 4294901760, %v1877_v25 }
 0x668   : > { %v5713_v43 = vpack.c.bf16 %v1843_v11, %v1836_v47  ;;  %v5725_v11 = vpack.c.bf16 %v6998_v14, %v6996_v18  ;;  %v7935_v18 = vand.u32 4294901760, %v7006_v2  ;;  %v7941_v2 = vand.u32 4294901760, %v7045_v19  ;;  %v2338_v19 = vld [vmem:[#allocation4 + $0x200] sm:$0xff] }
 0x669   : > { %v5722_v47 = vpack.c.bf16 %v1885_v59, %v1878_v28 }
 0x6d0   : > { %v1652_v24 = vpop.permute.xlu0 %1651  ;;  %v1647_v25 = vpop.permute.xlu1 %1646 }
 0x6d1   : > { %v1654_v57 = vsel %vm945_vm2, 0.0, %v1652_v24  ;;  %v7152_v28 = vsel %vm945_vm2, %v1647_v25, 0.0 }
 0x6d2   : > { %v1656_v59 = vsel %vm1655_vm3, %v1654_v57, 0.0  ;;  %v1650_v16 = vmax.f32 %v7152_v28, 0.0  ;;  %3664 = vst [vmem:[%s6421_s4 + $0x10] sm:$0xff] (!%p3824_p9), %v7152_v28 }
 0x6d3   : > { %1657 = vst [vmem:[#allocation2 + $0x8] sm:$0xff] %v1656_v59 }
 0x6d4   : > { %v7155_v13 = vand.u32 4294901760, %v1650_v16  ;;  %3652 = vst [vmem:[%s6426_s7 + $0x8] sm:$0xff] %v1650_v16  ;;  %v7158_v44 = vpop.permute.xlu0 %1659  ;;  %v7160_v40 = vpop.permute.xlu1 %950 }
 0x6d5   : > { %1662 = vst.msk [vmem:[#allocation3 + $0x8] sm:$0xff] %vm945_vm2, %v7158_v44  ;;  %953 = vst.msk [vmem:[#allocation3] sm:$0xff] %vm945_vm2, %v7160_v40 }
 0x6d6   : > { %v7167_v24 = vsub.f32 %v1650_v16, %v7155_v13 }
 0x6d8   : > { %v7890_v25 = vand.u32 4294901760, %v7167_v24 }
 0x6da   : > { %v1768_v57 = vsub.f32 %v7167_v24, %v7890_v25 }
 0x6dc   : > { %v1769_v59 = vand.u32 4294901760, %v1768_v57  ;;  %v2329_v57 = vld [vmem:[#allocation4 + $0x1b8] sm:$0xff] }
 0x6de   : > { %4791 = vmatmul.mubr.f32.vlgmr.msra.gmra.mrb[2].mxu0 %v1769_v59  ;;  %v2359_v59 = vand.u32 4294901760, %v2329_v57 }
 0x6df   : > { %5702 = vmatpush3.bf16.msra.mxu0 %v7078_v42  ;;  %4825 = vmatprep.mubr.msk.f32.mxu0 %vm6311_vm1, %v7909_v12  ;;  %v2325_v42 = vld [vmem:[#allocation4 + $0x198] sm:$0xff] }
 0x6e0   : > { %5703 = vmatprep.subr.bf16.mxu0 %v6310_v4  ;;  %v7202_v25 = vsub.f32 %v2329_v57, %v2359_v59 }
 0x6e3   : > { %5705 = vmatpush3.bf16.msra.mxu0 %v7082_v34  ;;  %v2326_v34 = vld [vmem:[#allocation4 + $0x1a0] sm:$0xff] }
 0x6e4   : > { %5706 = vmatprep.subr.bf16.mxu0 %v6310_v4 }
 0x6e7   : > { %5708 = vmatpush3.bf16.msra.mxu0 %v7094_v15  ;;  %v2327_v15 = vld [vmem:[#allocation4 + $0x1a8] sm:$0xff] }
 0x6e8   : > { %5709 = vmatprep.subr.bf16.mxu0 %v6310_v4  ;;  %v2353_v16 = vand.u32 4294901760, %v2327_v15 }
 0x6ea   : > { %v7196_v3 = vsub.f32 %v2327_v15, %v2353_v16  ;;  %v2374_v15 = vand.u32 4294901760, %v2334_v41 }
 0x6eb   : > { %5711 = vmatpush3.bf16.msra.mxu0 %v5710_v23  ;;  %v2347_v23 = vand.u32 4294901760, %v2325_v42 }
 0x6ec   : > { %5712 = vmatprep.subr.bf16.mxu0 %v6310_v4  ;;  %v7218_v57 = vsub.f32 %v2334_v41, %v2374_v15 }
 0x6ef   : > { %5714 = vmatpush3.bf16.msra.mxu0 %v5713_v43  ;;  %v2350_v43 = vand.u32 4294901760, %v2326_v34 }
 0x6f0   : > { %5715 = vmatprep.subr.bf16.mxu0 %v6310_v4 }
 0x6f1   : > { %v7190_v9 = vpack.c.bf16 %v2350_v43, %v2347_v23  ;;  %v7194_v50 = vsub.f32 %v2326_v34, %v2350_v43  ;;  %v2368_v34 = vand.u32 4294901760, %v2332_v26 }
 0x6f3   : > { %5717 = vmatpush3.bf16.msra.mxu0 %v5716_v58  ;;  %v2328_v58 = vld [vmem:[#allocation4 + $0x1b0] sm:$0xff]  ;;  %5822 = vmatpush3.bf16.msra.mxu1 %v7190_v9 }
 0x6f4   : > { %5718 = vmatprep.subr.bf16.mxu0 %v6310_v4  ;;  %5823 = vmatprep.subr.bf16.mxu1 %v6310_v4 }
 0x6f7   : > { %5720 = vmatpush3.bf16.msra.mxu0 %v5719_v17  ;;  %v2330_v17 = vld [vmem:[#allocation4 + $0x1c0] sm:$0xff] }
 0x6f8   : > { %5721 = vmatprep.subr.bf16.mxu0 %v6310_v4  ;;  %v2362_v38 = vand.u32 4294901760, %v2330_v17 }
 0x6fa   : > { %v7208_v49 = vsub.f32 %v2330_v17, %v2362_v38 }
 0x6fb   : > { %5723 = vmatpush3.bf16.msra.mxu0 %v5722_v47  ;;  %v2356_v47 = vand.u32 4294901760, %v2328_v58 }
 0x6fc   : > { %5724 = vmatprep.subr.bf16.mxu0 %v6310_v4 }
 0x6fd   : > { %v7198_v30 = vpack.c.bf16 %v2356_v47, %v2353_v16  ;;  %v7200_v46 = vsub.f32 %v2328_v58, %v2356_v47  ;;  %v7214_v58 = vsub.f32 %v2332_v26, %v2368_v34  ;;  %v7931_v26 = vand.u32 4294901760, %v6998_v14 }
 0x6fe   : > { %4826 = vmatmul.mubr.f32.vlgmr.msra.gmra.mrb[2].mxu0 %v7155_v13  ;;  %v7936_v14 = vand.u32 4294901760, %v7009_v0  ;;  %v7942_v0 = vand.u32 4294901760, %v7047_v51  ;;  %v2386_v51 = vand.u32 4294901760, %v2338_v19 }
 0x6ff   : > { %5726 = vmatpush3.bf16.msra.mxu0 %v5725_v11  ;;  %4860 = vmatprep.mubr.msk.f32.mxu0 %vm6311_vm1, %v7909_v12  ;;  %v7192_v11 = vsub.f32 %v2325_v42, %v2347_v23  ;;  %v2365_v42 = vand.u32 4294901760, %v2331_v48  ;;  %v2371_v23 = vand.u32 4294901760, %v2333_v55 }
 0x700   : > { %5727 = vmatprep.subr.bf16.mxu0 %v6310_v4  ;;  %5825 = vmatpush3.bf16.msra.mxu1 %v7198_v30  ;;  %v5788_v17 = vpack.c.bf16 %v7942_v0, %v7941_v2  ;;  %v7903_v2 = vand.u32 4294901760, %v7202_v25  ;;  %v7902_v0 = vand.u32 4294901760, %v7208_v49 }
 0x701   : > { %v7212_v43 = vsub.f32 %v2331_v48, %v2365_v42  ;;  %v7216_v16 = vsub.f32 %v2333_v55, %v2371_v23  ;;  %5826 = vmatprep.subr.bf16.mxu1 %v6310_v4  ;;  %v7232_v41 = vpack.c.bf16 %v2368_v34, %v2365_v42  ;;  %v7240_v55 = vpack.c.bf16 %v2374_v15, %v2371_v23 }
 0x702   : > { %v5773_v48 = vpack.c.bf16 %v7931_v26, %v1778_v36  ;;  %v5779_v36 = vpack.c.bf16 %v7936_v14, %v7935_v18  ;;  %v7907_v42 = vand.u32 4294901760, %v7194_v50  ;;  %v7359_v26 = vsub.f32 %v2338_v19, %v2386_v51 }
 0x703   : > { %5729 = vmatpush3.bf16.msra.mxu0 %v5728_v62  ;;  %v7224_v62 = vpack.c.bf16 %v2362_v38, %v2359_v59  ;;  %v7932_v38 = vand.u32 4294901760, %v7167_v24  ;;  %v7905_v14 = vand.u32 4294901760, %v7196_v3  ;;  %v7899_v19 = vand.u32 4294901760, %v7216_v16 }
 0x704   : > { %5730 = vmatprep.subr.bf16.mxu0 %v6310_v4 }
 0x705   : > { %5828 = vmatpush3.bf16.msra.mxu1 %v7224_v62 }
 0x706   : > { %5829 = vmatprep.subr.bf16.mxu1 %v6310_v4 }
 0x707   : > { %5732 = vmatpush3.bf16.msra.mxu0 %v5731_v6  ;;  %v7933_v6 = vand.u32 4294901760, %v7000_v27  ;;  %v7938_v27 = vand.u32 4294901760, %v7015_v8  ;;  %v7944_v8 = vand.u32 4294901760, %v7051_v61  ;;  %v2339_v61 = vld [vmem:[#allocation4 + $0x208] sm:$0xff] }
 0x708   : > { %5733 = vmatprep.subr.bf16.mxu0 %v6310_v4 }
 0x709   : > { %5831 = vmatpush3.bf16.msra.mxu1 %v7232_v41 }
 0x70a   : > { %5832 = vmatprep.subr.bf16.mxu1 %v6310_v4 }
 0x70b   : > { %5735 = vmatpush3.bf16.msra.mxu0 %v5734_v54  ;;  %v7934_v54 = vand.u32 4294901760, %v7004_v63 }
 0x70c   : > { %5736 = vmatprep.subr.bf16.mxu0 %v6310_v4 }
 0x70d   : > { %5834 = vmatpush3.bf16.msra.mxu1 %v7240_v55 }
 0x70e   : > { %5835 = vmatprep.subr.bf16.mxu1 %v6310_v4 }
 0x70f   : > { %5738 = vmatpush3.bf16.msra.mxu0 %v5737_v35  ;;  %v5776_v35 = vpack.c.bf16 %v7934_v54, %v7933_v6 }
 0x710   : > { %5739 = vmatprep.subr.bf16.mxu0 %v6310_v4 }
 0x713   : > { %5741 = vmatpush3.bf16.msra.mxu0 %v5740_v39  ;;  %v7937_v39 = vand.u32 4294901760, %v7013_v7  ;;  %v7943_v7 = vand.u32 4294901760, %v7049_v56 }
 0x714   : > { %5742 = vmatprep.subr.bf16.mxu0 %v6310_v4 }
 0x715   : > { %v5782_v63 = vpack.c.bf16 %v7938_v27, %v7937_v39  ;;  %v5791_v47 = vpack.c.bf16 %v7944_v8, %v7943_v7  ;;  %v2455_v27 = vsub.f32 %v7196_v3, %v7905_v14  ;;  %v2469_v7 = vsub.f32 %v7202_v25, %v7903_v2  ;;  %v2997_v2 = vld [vmem:[#allocation4 + $0x268] sm:$0xff] }
 0x716   : > { %v2476_v8 = vsub.f32 %v7208_v49, %v7902_v0 }
 0x717   : > { %5744 = vmatpush3.bf16.msra.mxu0 %v5743_v20  ;;  %v7939_v20 = vand.u32 4294901760, %v7017_v1  ;;  %v7945_v1 = vand.u32 4294901760, %v7055_v37  ;;  %v2389_v37 = vand.u32 4294901760, %v2339_v61 }
 0x718   : > { %5745 = vmatprep.subr.bf16.mxu0 %v6310_v4 }
 0x71b   : > { %5747 = vmatpush3.bf16.msra.mxu0 %v5746_v21  ;;  %v7940_v21 = vand.u32 4294901760, %v7019_v10  ;;  %v7946_v10 = vand.u32 4294901760, %v7057_v60 }
 0x71c   : > { %5748 = vmatprep.subr.bf16.mxu0 %v6310_v4 }
 0x71d   : > { %v5794_v59 = vpack.c.bf16 %v7946_v10, %v7945_v1  ;;  %v2477_v1 = vand.u32 4294901760, %v2476_v8  ;;  %v7901_v10 = vand.u32 4294901760, %v7212_v43 }
 0x71e   : > { %4861 = vmatmul.mubr.f32.vlgmr.msra.gmra.mrb[2].mxu0 %v7167_v24  ;;  %v5785_v24 = vpack.c.bf16 %v7940_v21, %v7939_v20  ;;  %v2456_v21 = vand.u32 4294901760, %v2455_v27 }
 0x71f   : > { %5750 = vmatpush3.bf16.msra.mxu0 %v6994_v5  ;;  %4895 = vmatprep.mubr.msk.f32.mxu0 %vm6311_vm1, %v7909_v12 }
 0x720   : > { %5751 = vmatprep.subr.bf16.mxu0 %v6310_v4 }
 0x723   : > { %5753 = vmatpush3.bf16.msra.mxu0 %v7002_v45 }
 0x724   : > { %5754 = vmatprep.subr.bf16.mxu0 %v6310_v4 }
 0x727   : > { %5756 = vmatpush3.bf16.msra.mxu0 %v7022_v32 }
 0x728   : > { %5757 = vmatprep.subr.bf16.mxu0 %v6310_v4 }
 0x72b   : > { %5759 = vmatpush3.bf16.msra.mxu0 %v7026_v52 }
 0x72c   : > { %5760 = vmatprep.subr.bf16.mxu0 %v6310_v4 }
 0x72f   : > { %5762 = vmatpush3.bf16.msra.mxu0 %v7030_v53 }
 0x730   : > { %5763 = vmatprep.subr.bf16.mxu0 %v6310_v4 }
 0x733   : > { %5765 = vmatpush3.bf16.msra.mxu0 %v7035_v22 }
 0x734   : > { %5766 = vmatprep.subr.bf16.mxu0 %v6310_v4 }
 0x737   : > { %5768 = vmatpush3.bf16.msra.mxu0 %v7039_v29 }
 0x738   : > { %5769 = vmatprep.subr.bf16.mxu0 %v6310_v4 }
 0x73b   : > { %5771 = vmatpush3.bf16.msra.mxu0 %v7053_v33 }
 0x73c   : > { %5772 = vmatprep.subr.bf16.mxu0 %v6310_v4 }
 0x73e   : > { %4896 = vmatmul.mubr.f32.vlgmr.msra.gmra.mrb[2].mxu0 %v7932_v38  ;;  %v7363_v38 = vsub.f32 %v2339_v61, %v2389_v37  ;;  %v2497_v61 = vsub.f32 %v7216_v16, %v7899_v19  ;;  %v2996_v19 = vld [vmem:[#allocation4 + $0x260] sm:$0xff] }
 0x73f   : > { %5774 = vmatpush3.bf16.msra.mxu0 %v5773_v48  ;;  %4930 = vmatprep.mubr.msk.f32.mxu0 %vm6311_vm1, %v7909_v12 }
 0x740   : > { %5775 = vmatprep.subr.bf16.mxu0 %v6310_v4 }
 0x743   : > { %5777 = vmatpush3.bf16.msra.mxu0 %v5776_v35  ;;  %v2448_v35 = vsub.f32 %v7194_v50, %v7907_v42 }
 0x744   : > { %5778 = vmatprep.subr.bf16.mxu0 %v6310_v4 }
 0x745   : > { %v2449_v39 = vand.u32 4294901760, %v2448_v35 }
 0x747   : > { %5780 = vmatpush3.bf16.msra.mxu0 %v5779_v36  ;;  %v7904_v36 = vand.u32 4294901760, %v7200_v46 }
 0x748   : > { %5781 = vmatprep.subr.bf16.mxu0 %v6310_v4 }
 0x74b   : > { %5783 = vmatpush3.bf16.msra.mxu0 %v5782_v63  ;;  %v2462_v63 = vsub.f32 %v7200_v46, %v7904_v36 }
 0x74c   : > { %5784 = vmatprep.subr.bf16.mxu0 %v6310_v4 }
 0x74f   : > { %5786 = vmatpush3.bf16.msra.mxu0 %v5785_v24  ;;  %v2463_v24 = vand.u32 4294901760, %v2462_v63 }
 0x750   : > { %5787 = vmatprep.subr.bf16.mxu0 %v6310_v4 }
 0x753   : > { %5789 = vmatpush3.bf16.msra.mxu0 %v5788_v17  ;;  %v5848_v17 = vpack.c.bf16 %v2463_v24, %v2456_v21 }
 0x754   : > { %5790 = vmatprep.subr.bf16.mxu0 %v6310_v4 }
 0x757   : > { %5792 = vmatpush3.bf16.msra.mxu0 %v5791_v47  ;;  %v2470_v47 = vand.u32 4294901760, %v2469_v7  ;;  %v7894_v7 = vand.u32 4294901760, %v7359_v26 }
 0x758   : > { %5793 = vmatprep.subr.bf16.mxu0 %v6310_v4 }
 0x75b   : > { %5795 = vmatpush3.bf16.msra.mxu0 %v5794_v59  ;;  %v7900_v59 = vand.u32 4294901760, %v7214_v58 }
 0x75c   : > { %5796 = vmatprep.subr.bf16.mxu0 %v6310_v4 }
 0x75e   : > { %4931 = vmatmul.mubr.f32.vlgmr.msra.gmra.mrb[2].mxu0 %v7155_v13 }
 0x75f   : > { %5798 = vmatpush3.bf16.msra.mxu0 %v6994_v5  ;;  %4965 = vmatprep.mubr.msk.f32.mxu0 %vm6311_vm1, %v7909_v12  ;;  %v2335_v5 = vld [vmem:[#allocation4 + $0x1e8] sm:$0xff] }
 0x760   : > { %5799 = vmatprep.subr.bf16.mxu0 %v6310_v4 }
 0x763   : > { %5801 = vmatpush3.bf16.msra.mxu0 %v7002_v45  ;;  %v2336_v45 = vld [vmem:[#allocation4 + $0x1f0] sm:$0xff] }
 0x764   : > { %5802 = vmatprep.subr.bf16.mxu0 %v6310_v4 }
 0x767   : > { %5804 = vmatpush3.bf16.msra.mxu0 %v7022_v32  ;;  %v2377_v32 = vand.u32 4294901760, %v2335_v5 }
 0x768   : > { %5805 = vmatprep.subr.bf16.mxu0 %v6310_v4 }
 0x769   : > { %v7353_v34 = vsub.f32 %v2335_v5, %v2377_v32  ;;  %v5851_v5 = vpack.c.bf16 %v2477_v1, %v2470_v47  ;;  %v2532_v1 = vsub.f32 %v7359_v26, %v7894_v7 }
 0x76b   : > { %5807 = vmatpush3.bf16.msra.mxu0 %v7026_v52  ;;  %v2380_v52 = vand.u32 4294901760, %v2336_v45 }
 0x76c   : > { %5808 = vmatprep.subr.bf16.mxu0 %v6310_v4 }
 0x76d   : > { %v7355_v23 = vsub.f32 %v2336_v45, %v2380_v52  ;;  %v2483_v45 = vsub.f32 %v7212_v43, %v7901_v10 }
 0x76f   : > { %5810 = vmatpush3.bf16.msra.mxu0 %v7030_v53  ;;  %v7343_v53 = vpack.c.bf16 %v2380_v52, %v2377_v32  ;;  %v2490_v32 = vsub.f32 %v7214_v58, %v7900_v59  ;;  %v2484_v52 = vand.u32 4294901760, %v2483_v45  ;;  %v7896_v35 = vand.u32 4294901760, %v7355_v23 }
 0x770   : > { %5811 = vmatprep.subr.bf16.mxu0 %v6310_v4 }
 0x771   : > { %5837 = vmatpush3.bf16.msra.mxu1 %v7343_v53  ;;  %v2518_v27 = vsub.f32 %v7355_v23, %v7896_v35 }
 0x772   : > { %5838 = vmatprep.subr.bf16.mxu1 %v6310_v4 }
 0x773   : > { %5813 = vmatpush3.bf16.msra.mxu0 %v7035_v22  ;;  %v2337_v22 = vld [vmem:[#allocation4 + $0x1f8] sm:$0xff]  ;;  %v2519_v21 = vand.u32 4294901760, %v2518_v27 }
 0x774   : > { %5814 = vmatprep.subr.bf16.mxu0 %v6310_v4 }
 0x777   : > { %5816 = vmatpush3.bf16.msra.mxu0 %v7039_v29  ;;  %v2383_v29 = vand.u32 4294901760, %v2337_v22 }
 0x778   : > { %5817 = vmatprep.subr.bf16.mxu0 %v6310_v4 }
 0x779   : > { %v7347_v56 = vpack.c.bf16 %v2386_v51, %v2383_v29  ;;  %v7357_v15 = vsub.f32 %v2337_v22, %v2383_v29  ;;  %v2491_v22 = vand.u32 4294901760, %v2490_v32  ;;  %v7898_v29 = vand.u32 4294901760, %v7218_v57 }
 0x77a   : > { %v2533_v32 = vand.u32 4294901760, %v2532_v1  ;;  %v5878_v1 = vpack.c.bf16 %v7214_v58, %v7212_v43 }
 0x77b   : > { %5819 = vmatpush3.bf16.msra.mxu0 %v7053_v33  ;;  %v2340_v33 = vld [vmem:[#allocation4 + $0x210] sm:$0xff]  ;;  %5840 = vmatpush3.bf16.msra.mxu1 %v7347_v56  ;;  %v5854_v51 = vpack.c.bf16 %v2491_v22, %v2484_v52  ;;  %v7895_v24 = vand.u32 4294901760, %v7357_v15  ;;  %v7893_v52 = vand.u32 4294901760, %v7363_v38 }
 0x77c   : > { %5964 = vmatprep.subr.bf16.mxu0 %v6310_v4  ;;  %v2392_v60 = vand.u32 4294901760, %v2340_v33  ;;  %5841 = vmatprep.subr.bf16.mxu1 %v6310_v4 }
 0x77d   : > { %v2525_v47 = vsub.f32 %v7357_v15, %v7895_v24 }
 0x77e   : > { %4966 = vmatmul.mubr.f32.vlgmr.msra.gmra.mrb[2].mxu0 %v7155_v13  ;;  %v7908_v13 = vand.u32 4294901760, %v7192_v11  ;;  %v7361_v48 = vpack.c.bf16 %v2392_v60, %v2389_v37  ;;  %v7365_v6 = vsub.f32 %v2340_v33, %v2392_v60  ;;  %v2504_v33 = vsub.f32 %v7218_v57, %v7898_v29 }
 0x77f   : > { %5210 = vmatprep.mubr.msk.f32.mxu0 %vm6311_vm1, %v7909_v12  ;;  %v2498_v37 = vand.u32 4294901760, %v2497_v61  ;;  %v2526_v45 = vand.u32 4294901760, %v2525_v47  ;;  %v5875_v47 = vpack.c.bf16 %v7208_v49, %v7202_v25 }
 0x780   : > { %v2441_v54 = vsub.f32 %v7192_v11, %v7908_v13  ;;  %5843 = vmatpush3.bf16.msra.mxu1 %v7361_v48  ;;  %v2505_v60 = vand.u32 4294901760, %v2504_v33  ;;  %v7892_v22 = vand.u32 4294901760, %v7365_v6  ;;  %v2539_v33 = vsub.f32 %v7363_v38, %v7893_v52 }
 0x781   : > { %5844 = vmatprep.subr.bf16.mxu1 %v6310_v4  ;;  %v5863_v61 = vpack.c.bf16 %v2533_v32, %v2526_v45  ;;  %v5881_v45 = vpack.c.bf16 %v7218_v57, %v7216_v16  ;;  %v5884_v32 = vpack.c.bf16 %v7355_v23, %v7353_v34 }
 0x782   : > { %v2442_v18 = vand.u32 4294901760, %v2441_v54  ;;  %v7897_v54 = vand.u32 4294901760, %v7353_v34 }
 0x784   : > { %v7383_v20 = vpack.c.bf16 %v2449_v39, %v2442_v18  ;;  %v5857_v18 = vpack.c.bf16 %v2505_v60, %v2498_v37  ;;  %v2511_v39 = vsub.f32 %v7353_v34, %v7897_v54  ;;  %v2546_v37 = vsub.f32 %v7365_v6, %v7892_v22 }
 0x785   : > { %v2540_v60 = vand.u32 4294901760, %v2539_v33  ;;  %v5887_v33 = vpack.c.bf16 %v7359_v26, %v7357_v15 }
 0x786   : > { %v2512_v63 = vand.u32 4294901760, %v2511_v39  ;;  %v2547_v39 = vand.u32 4294901760, %v2546_v37  ;;  %v5890_v37 = vpack.c.bf16 %v7365_v6, %v7363_v38 }
 0x788   : > { %v5860_v8 = vpack.c.bf16 %v2519_v21, %v2512_v63  ;;  %v5866_v27 = vpack.c.bf16 %v2547_v39, %v2540_v60  ;;  %v5869_v63 = vpack.c.bf16 %v7194_v50, %v7192_v11  ;;  %v5872_v21 = vpack.c.bf16 %v7200_v46, %v7196_v3  ;;  %v3821_v60 = vld [vmem:[#allocation4 + $0x190] ss:$0 sm:$0xff] }
 0x851   : > { %v2321_v39 = vpop.f32.mrb[2].mxu0 }
 0x852   : > { %v6111_v22 = vadd.f32 %v3821_v60, %v2321_v39  ;;  %v4967_v52 = vpop.f32.mrb[3].mxu0  ;;  %v2994_v60 = vld [vmem:[#allocation4 + $0x250] sm:$0xff]  ;;  %v2995_v39 = vld [vmem:[#allocation4 + $0x258] sm:$0xff] }
 0x853   : > { %v2993_v52 = vld [vmem:[#allocation4 + $0x248] sm:$0xff]  ;;  %v3028_v13 = vand.u32 4294901760, %v2994_v60 }
 0x854   : > { %v7449_v7 = vand.u32 4294901760, %v6111_v22  ;;  %3653 = vst [vmem:[%s6426_s7 + $0x10] sm:$0xff] %v6111_v22 }
 0x856   : > { %v7453_v24 = vsub.f32 %v6111_v22, %v7449_v7 }
 0x858   : > { %v7906_v35 = vand.u32 4294901760, %v7453_v24 }
 0x85a   : > { %v2430_v54 = vsub.f32 %v7453_v24, %v7906_v35 }
 0x85c   : > { %v2431_v29 = vand.u32 4294901760, %v2430_v54  ;;  %v2991_v54 = vld [vmem:[#allocation4 + $0x238] sm:$0xff] }
 0x85d   : > { %v3019_v22 = vand.u32 4294901760, %v2991_v54 }
 0x85e   : > { %5001 = vmatmul.mubr.f32.vlgmr.msra.gmra.mrb[4].mxu1 %v2431_v29 }
 0x85f   : > { %5846 = vmatpush3.bf16.msra.mxu1 %v7383_v20  ;;  %5035 = vmatprep.mubr.msk.f32.mxu1 %vm6311_vm1, %v7909_v12  ;;  %v2988_v20 = vld [vmem:[#allocation4 + $0x220] sm:$0xff]  ;;  %v7484_v14 = vsub.f32 %v2991_v54, %v3019_v22 }
 0x860   : > { %5847 = vmatprep.subr.bf16.mxu1 %v6310_v4  ;;  %v3010_v29 = vand.u32 4294901760, %v2988_v20 }
 0x863   : > { %5849 = vmatpush3.bf16.msra.mxu1 %v5848_v17  ;;  %v2989_v17 = vld [vmem:[#allocation4 + $0x228] sm:$0xff] }
 0x864   : > { %5850 = vmatprep.subr.bf16.mxu1 %v6310_v4 }
 0x867   : > { %5852 = vmatpush3.bf16.msra.mxu1 %v5851_v5  ;;  %v2990_v5 = vld [vmem:[#allocation4 + $0x230] sm:$0xff] }
 0x868   : > { %5853 = vmatprep.subr.bf16.mxu1 %v6310_v4 }
 0x86b   : > { %5855 = vmatpush3.bf16.msra.mxu1 %v5854_v51  ;;  %v3013_v51 = vand.u32 4294901760, %v2989_v17 }
 0x86c   : > { %5856 = vmatprep.subr.bf16.mxu1 %v6310_v4 }
 0x86d   : > { %v7474_v59 = vpack.c.bf16 %v3013_v51, %v3010_v29  ;;  %v7478_v10 = vsub.f32 %v2989_v17, %v3013_v51  ;;  %v3037_v17 = vand.u32 4294901760, %v2997_v2 }
 0x86f   : > { %5858 = vmatpush3.bf16.msra.mxu1 %v5857_v18  ;;  %v3016_v18 = vand.u32 4294901760, %v2990_v5  ;;  %5966 = vmatpush3.bf16.msra.mxu0 %v7474_v59  ;;  %v7499_v54 = vsub.f32 %v2997_v2, %v3037_v17 }
 0x870   : > { %5859 = vmatprep.subr.bf16.mxu1 %v6310_v4  ;;  %5967 = vmatprep.subr.bf16.mxu0 %v6310_v4 }
 0x871   : > { %v7480_v0 = vsub.f32 %v2990_v5, %v3016_v18  ;;  %v7482_v36 = vpack.c.bf16 %v3019_v22, %v3016_v18  ;;  %v7493_v5 = vsub.f32 %v2994_v60, %v3028_v13 }
 0x873   : > { %5861 = vmatpush3.bf16.msra.mxu1 %v5860_v8  ;;  %v2992_v8 = vld [vmem:[#allocation4 + $0x240] sm:$0xff]  ;;  %5969 = vmatpush3.bf16.msra.mxu0 %v7482_v36 }
 0x874   : > { %5862 = vmatprep.subr.bf16.mxu1 %v6310_v4  ;;  %5970 = vmatprep.subr.bf16.mxu0 %v6310_v4 }
 0x877   : > { %5864 = vmatpush3.bf16.msra.mxu1 %v5863_v61  ;;  %v3022_v61 = vand.u32 4294901760, %v2992_v8 }
 0x878   : > { %5865 = vmatprep.subr.bf16.mxu1 %v6310_v4 }
 0x879   : > { %v7486_v35 = vsub.f32 %v2992_v8, %v3022_v61  ;;  %v7957_v8 = vand.u32 4294901760, %v7216_v16  ;;  %v7963_v16 = vand.u32 4294901760, %v7363_v38 }
 0x87b   : > { %5867 = vmatpush3.bf16.msra.mxu1 %v5866_v27  ;;  %v3025_v27 = vand.u32 4294901760, %v2993_v52 }
 0x87c   : > { %5868 = vmatprep.subr.bf16.mxu1 %v6310_v4 }
 0x87d   : > { %v7489_v42 = vsub.f32 %v2993_v52, %v3025_v27  ;;  %v7958_v52 = vand.u32 4294901760, %v7218_v57  ;;  %v7964_v57 = vand.u32 4294901760, %v7365_v6 }
 0x87e   : > { %5036 = vmatmul.mubr.f32.vlgmr.msra.gmra.mrb[4].mxu1 %v7449_v7 }
 0x87f   : > { %5870 = vmatpush3.bf16.msra.mxu1 %v5869_v63  ;;  %5070 = vmatprep.mubr.msk.f32.mxu1 %vm6311_vm1, %v7909_v12  ;;  %v7476_v63 = vsub.f32 %v2988_v20, %v3010_v29  ;;  %v3031_v12 = vand.u32 4294901760, %v2995_v39  ;;  %v3034_v20 = vand.u32 4294901760, %v2996_v19  ;;  %v5929_v22 = vpack.c.bf16 %v7958_v52, %v7957_v8 }
 0x880   : > { %5871 = vmatprep.subr.bf16.mxu1 %v6310_v4  ;;  %v5938_v60 = vpack.c.bf16 %v7964_v57, %v7963_v16  ;;  %v3145_v57 = vand.u32 4294901760, %v7493_v5 }
 0x881   : > { %v7495_v29 = vsub.f32 %v2995_v39, %v3031_v12  ;;  %v7497_v51 = vsub.f32 %v2996_v19, %v3034_v20  ;;  %v7513_v2 = vpack.c.bf16 %v3031_v12, %v3028_v13  ;;  %v7521_v19 = vpack.c.bf16 %v3037_v17, %v3034_v20 }
 0x882   : > { %v7947_v12 = vmov 0.0   ;;  %v7948_v13 = vand.u32 4294901760, %v7192_v11  ;;  %v7954_v11 = vand.u32 4294901760, %v7208_v49  ;;  %v7959_v49 = vand.u32 4294901760, %v7353_v34 }
 0x883   : > { %5873 = vmatpush3.bf16.msra.mxu1 %v5872_v21  ;;  %v7505_v21 = vpack.c.bf16 %v3025_v27, %v3022_v61 }
 0x884   : > { %5874 = vmatprep.subr.bf16.mxu1 %v6310_v4 }
 0x885   : > { %5972 = vmatpush3.bf16.msra.mxu0 %v7505_v21 }
 0x886   : > { %5973 = vmatprep.subr.bf16.mxu0 %v6310_v4 }
 0x887   : > { %5876 = vmatpush3.bf16.msra.mxu1 %v5875_v47  ;;  %v7949_v47 = vand.u32 4294901760, %v7194_v50  ;;  %v7953_v50 = vand.u32 4294901760, %v7202_v25  ;;  %v7960_v25 = vand.u32 4294901760, %v7355_v23  ;;  %v3001_v23 = vld [vmem:[#allocation4 + $0x288] sm:$0xff] }
 0x888   : > { %5877 = vmatprep.subr.bf16.mxu1 %v6310_v4 }
 0x889   : > { %5975 = vmatpush3.bf16.msra.mxu0 %v7513_v2  ;;  %v5923_v18 = vpack.c.bf16 %v7954_v11, %v7953_v50  ;;  %v5932_v61 = vpack.c.bf16 %v7960_v25, %v7959_v49  ;;  %v3117_v11 = vand.u32 4294901760, %v7480_v0  ;;  %v3131_v49 = vand.u32 4294901760, %v7486_v35 }
 0x88a   : > { %5976 = vmatprep.subr.bf16.mxu0 %v6310_v4  ;;  %v3138_v25 = vand.u32 4294901760, %v7489_v42 }
 0x88b   : > { %5879 = vmatpush3.bf16.msra.mxu1 %v5878_v1  ;;  %v5917_v1 = vpack.c.bf16 %v7949_v47, %v7948_v13  ;;  %v3103_v13 = vand.u32 4294901760, %v7476_v63  ;;  %v3110_v47 = vand.u32 4294901760, %v7478_v10 }
 0x88c   : > { %5880 = vmatprep.subr.bf16.mxu1 %v6310_v4 }
 0x88d   : > { %5978 = vmatpush3.bf16.msra.mxu0 %v7521_v19 }
 0x88e   : > { %5979 = vmatprep.subr.bf16.mxu0 %v6310_v4 }
 0x88f   : > { %5882 = vmatpush3.bf16.msra.mxu1 %v5881_v45  ;;  %v7950_v45 = vand.u32 4294901760, %v7453_v24 }
 0x890   : > { %5883 = vmatprep.subr.bf16.mxu1 %v6310_v4 }
 0x893   : > { %5885 = vmatpush3.bf16.msra.mxu1 %v5884_v32  ;;  %v7951_v32 = vand.u32 4294901760, %v7196_v3  ;;  %v7956_v3 = vand.u32 4294901760, %v7214_v58  ;;  %v7962_v58 = vand.u32 4294901760, %v7359_v26  ;;  %v3002_v26 = vld [vmem:[#allocation4 + $0x290] sm:$0xff] }
 0x894   : > { %5886 = vmatprep.subr.bf16.mxu1 %v6310_v4  ;;  %v3052_v20 = vand.u32 4294901760, %v3002_v26 }
 0x897   : > { %5888 = vmatpush3.bf16.msra.mxu1 %v5887_v33  ;;  %v7952_v33 = vand.u32 4294901760, %v7200_v46 }
 0x898   : > { %5889 = vmatprep.subr.bf16.mxu1 %v6310_v4 }
 0x89b   : > { %5891 = vmatpush3.bf16.msra.mxu1 %v5890_v37  ;;  %v5920_v37 = vpack.c.bf16 %v7952_v33, %v7951_v32  ;;  %v3104_v33 = vsub.f32 %v7476_v63, %v3103_v13 }
 0x89c   : > { %5892 = vmatprep.subr.bf16.mxu1 %v6310_v4 }
 0x89d   : > { %v3105_v50 = vand.u32 4294901760, %v3104_v33 }
 0x89e   : > { %5071 = vmatmul.mubr.f32.vlgmr.msra.gmra.mrb[4].mxu1 %v7453_v24  ;;  %v7955_v24 = vand.u32 4294901760, %v7212_v43  ;;  %v7961_v43 = vand.u32 4294901760, %v7357_v15  ;;  %v3049_v15 = vand.u32 4294901760, %v3001_v23 }
 0x89f   : > { %5894 = vmatpush3.bf16.msra.mxu1 %v7190_v9  ;;  %5105 = vmatprep.mubr.msk.f32.mxu1 %vm6311_vm1, %v7947_v12 }
 0x8a0   : > { %5895 = vmatprep.subr.bf16.mxu1 %v6310_v4  ;;  %v5926_v46 = vpack.c.bf16 %v7956_v3, %v7955_v24  ;;  %v5935_v27 = vpack.c.bf16 %v7962_v58, %v7961_v43  ;;  %v7634_v39 = vsub.f32 %v3001_v23, %v3049_v15  ;;  %v3118_v3 = vsub.f32 %v7480_v0, %v3117_v11 }
 0x8a1   : > { %v3132_v43 = vsub.f32 %v7486_v35, %v3131_v49  ;;  %v3139_v58 = vsub.f32 %v7489_v42, %v3138_v25  ;;  %v7918_v23 = vand.u32 4294901760, %v7497_v51 }
 0x8a2   : > { %v3119_v52 = vand.u32 4294901760, %v3118_v3 }
 0x8a3   : > { %5897 = vmatpush3.bf16.msra.mxu1 %v7198_v30  ;;  %v3140_v16 = vand.u32 4294901760, %v3139_v58 }
 0x8a4   : > { %5898 = vmatprep.subr.bf16.mxu1 %v6310_v4 }
 0x8a7   : > { %5900 = vmatpush3.bf16.msra.mxu1 %v7224_v62 }
 0x8a8   : > { %5901 = vmatprep.subr.bf16.mxu1 %v6310_v4 }
 0x8ab   : > { %5903 = vmatpush3.bf16.msra.mxu1 %v7232_v41 }
 0x8ac   : > { %5904 = vmatprep.subr.bf16.mxu1 %v6310_v4 }
 0x8af   : > { %5906 = vmatpush3.bf16.msra.mxu1 %v7240_v55 }
 0x8b0   : > { %5907 = vmatprep.subr.bf16.mxu1 %v6310_v4 }
 0x8b3   : > { %5909 = vmatpush3.bf16.msra.mxu1 %v7343_v53 }
 0x8b4   : > { %5910 = vmatprep.subr.bf16.mxu1 %v6310_v4 }
 0x8b7   : > { %5912 = vmatpush3.bf16.msra.mxu1 %v7347_v56 }
 0x8b8   : > { %5913 = vmatprep.subr.bf16.mxu1 %v6310_v4 }
 0x8bb   : > { %5915 = vmatpush3.bf16.msra.mxu1 %v7361_v48 }
 0x8bc   : > { %5916 = vmatprep.subr.bf16.mxu1 %v6310_v4 }
 0x8be   : > { %5106 = vmatmul.mubr.f32.vlgmr.msra.gmra.mrb[4].mxu1 %v7950_v45  ;;  %v7641_v45 = vsub.f32 %v3002_v26, %v3052_v20  ;;  %v3160_v26 = vsub.f32 %v7497_v51, %v7918_v23 }
 0x8bf   : > { %5918 = vmatpush3.bf16.msra.mxu1 %v5917_v1  ;;  %5140 = vmatprep.mubr.msk.f32.mxu1 %vm6311_vm1, %v7947_v12 }
 0x8c0   : > { %5919 = vmatprep.subr.bf16.mxu1 %v6310_v4 }
 0x8c3   : > { %5921 = vmatpush3.bf16.msra.mxu1 %v5920_v37  ;;  %v3111_v37 = vsub.f32 %v7478_v10, %v3110_v47 }
 0x8c4   : > { %5922 = vmatprep.subr.bf16.mxu1 %v6310_v4 }
 0x8c5   : > { %v3112_v24 = vand.u32 4294901760, %v3111_v37 }
 0x8c7   : > { %5924 = vmatpush3.bf16.msra.mxu1 %v5923_v18  ;;  %v3124_v18 = vand.u32 4294901760, %v7484_v14  ;;  %v7661_v8 = vpack.c.bf16 %v3112_v24, %v3105_v50 }
 0x8c8   : > { %5925 = vmatprep.subr.bf16.mxu1 %v6310_v4 }
 0x8cb   : > { %5927 = vmatpush3.bf16.msra.mxu1 %v5926_v46  ;;  %v3125_v46 = vsub.f32 %v7484_v14, %v3124_v18 }
 0x8cc   : > { %5928 = vmatprep.subr.bf16.mxu1 %v6310_v4 }
 0x8cf   : > { %5930 = vmatpush3.bf16.msra.mxu1 %v5929_v22  ;;  %v3126_v22 = vand.u32 4294901760, %v3125_v46 }
 0x8d0   : > { %5931 = vmatprep.subr.bf16.mxu1 %v6310_v4 }
 0x8d3   : > { %5933 = vmatpush3.bf16.msra.mxu1 %v5932_v61  ;;  %v7665_v61 = vpack.c.bf16 %v3126_v22, %v3119_v52 }
 0x8d4   : > { %5934 = vmatprep.subr.bf16.mxu1 %v6310_v4 }
 0x8d7   : > { %5936 = vmatpush3.bf16.msra.mxu1 %v5935_v27  ;;  %v3133_v27 = vand.u32 4294901760, %v3132_v43  ;;  %v7913_v43 = vand.u32 4294901760, %v7634_v39 }
 0x8d8   : > { %5937 = vmatprep.subr.bf16.mxu1 %v6310_v4 }
 0x8db   : > { %5939 = vmatpush3.bf16.msra.mxu1 %v5938_v60  ;;  %v3152_v60 = vand.u32 4294901760, %v7495_v29 }
 0x8dc   : > { %5940 = vmatprep.subr.bf16.mxu1 %v6310_v4 }
 0x8de   : > { %5141 = vmatmul.mubr.f32.vlgmr.msra.gmra.mrb[4].mxu1 %v7449_v7 }
 0x8df   : > { %5942 = vmatpush3.bf16.msra.mxu1 %v7190_v9  ;;  %5175 = vmatprep.mubr.msk.f32.mxu1 %vm6311_vm1, %v7947_v12  ;;  %v2999_v9 = vld [vmem:[#allocation4 + $0x278] sm:$0xff] }
 0x8e0   : > { %5943 = vmatprep.subr.bf16.mxu1 %v6310_v4 }
 0x8e3   : > { %5945 = vmatpush3.bf16.msra.mxu1 %v7198_v30  ;;  %v2998_v30 = vld [vmem:[#allocation4 + $0x270] sm:$0xff] }
 0x8e4   : > { %5946 = vmatprep.subr.bf16.mxu1 %v6310_v4 }
 0x8e7   : > { %5948 = vmatpush3.bf16.msra.mxu1 %v7224_v62  ;;  %v3040_v62 = vand.u32 4294901760, %v2998_v30 }
 0x8e8   : > { %5949 = vmatprep.subr.bf16.mxu1 %v6310_v4 }
 0x8e9   : > { %v7627_v38 = vsub.f32 %v2998_v30, %v3040_v62  ;;  %v5995_v30 = vpack.c.bf16 %v3140_v16, %v3133_v27  ;;  %v3195_v16 = vsub.f32 %v7634_v39, %v7913_v43 }
 0x8eb   : > { %5951 = vmatpush3.bf16.msra.mxu1 %v7232_v41  ;;  %v3043_v41 = vand.u32 4294901760, %v2999_v9  ;;  %v7916_v33 = vand.u32 4294901760, %v7627_v38 }
 0x8ec   : > { %5952 = vmatprep.subr.bf16.mxu1 %v6310_v4 }
 0x8ed   : > { %v7621_v34 = vpack.c.bf16 %v3043_v41, %v3040_v62  ;;  %v7629_v6 = vsub.f32 %v2999_v9, %v3043_v41  ;;  %v3146_v9 = vsub.f32 %v7493_v5, %v3145_v57  ;;  %v3153_v62 = vsub.f32 %v7495_v29, %v3152_v60 }
 0x8ee   : > { %v3174_v24 = vsub.f32 %v7627_v38, %v7916_v33 }
 0x8ef   : > { %5954 = vmatpush3.bf16.msra.mxu1 %v7240_v55  ;;  %v3000_v55 = vld [vmem:[#allocation4 + $0x280] sm:$0xff]  ;;  %5981 = vmatpush3.bf16.msra.mxu0 %v7621_v34  ;;  %v3147_v41 = vand.u32 4294901760, %v3146_v9  ;;  %v7915_v37 = vand.u32 4294901760, %v7629_v6 }
 0x8f0   : > { %5955 = vmatprep.subr.bf16.mxu1 %v6310_v4  ;;  %5982 = vmatprep.subr.bf16.mxu0 %v6310_v4  ;;  %v3175_v46 = vand.u32 4294901760, %v3174_v24 }
 0x8f1   : > { %v3181_v3 = vsub.f32 %v7629_v6, %v7915_v37 }
 0x8f3   : > { %5957 = vmatpush3.bf16.msra.mxu1 %v7343_v53  ;;  %v3046_v53 = vand.u32 4294901760, %v3000_v55  ;;  %v3182_v52 = vand.u32 4294901760, %v3181_v3 }
 0x8f4   : > { %5958 = vmatprep.subr.bf16.mxu1 %v6310_v4 }
 0x8f5   : > { %v6004_v58 = vpack.c.bf16 %v3182_v52, %v3175_v46  ;;  %v6013_v46 = vpack.c.bf16 %v7478_v10, %v7476_v63  ;;  %v6016_v52 = vpack.c.bf16 %v7484_v14, %v7480_v0  ;;  %v6067_v10 = vpack.c.bf16 %v3138_v25, %v3131_v49 }
 0x8f6   : > { %v6070_v14 = vpack.c.bf16 %v3152_v60, %v3145_v57  ;;  %v7965_v0 = vand.u32 4294901760, %v7497_v51  ;;  %v7966_v63 = vand.u32 4294901760, %v7499_v54 }
 0x8f7   : > { %5960 = vmatpush3.bf16.msra.mxu1 %v7347_v56  ;;  %v7625_v56 = vpack.c.bf16 %v3049_v15, %v3046_v53 }
 0x8f8   : > { %5961 = vmatprep.subr.bf16.mxu1 %v6310_v4 }
 0x8f9   : > { %5984 = vmatpush3.bf16.msra.mxu0 %v7625_v56 }
 0x8fa   : > { %5985 = vmatprep.subr.bf16.mxu0 %v6310_v4 }
 0x8fb   : > { %5963 = vmatpush3.bf16.msra.mxu1 %v7361_v48  ;;  %v3003_v48 = vld [vmem:[#allocation4 + $0x298] sm:$0xff] }
 0x8fc   : > { %v3055_v17 = vand.u32 4294901760, %v3003_v48 }
 0x8fe   : > { %5176 = vmatmul.mubr.f32.vlgmr.msra.gmra.mrb[4].mxu1 %v7449_v7  ;;  %v7632_v7 = vsub.f32 %v3000_v55, %v3046_v53  ;;  %v7639_v1 = vpack.c.bf16 %v3055_v17, %v3052_v20  ;;  %v7643_v32 = vsub.f32 %v3003_v48, %v3055_v17  ;;  %v3154_v55 = vand.u32 4294901760, %v3153_v62 }
 0x8ff   : > { %v7917_v53 = vand.u32 4294901760, %v7499_v54  ;;  %v3161_v20 = vand.u32 4294901760, %v3160_v26  ;;  %v3196_v62 = vand.u32 4294901760, %v3195_v16  ;;  %v6022_v16 = vpack.c.bf16 %v7495_v29, %v7493_v5 }
 0x900   : > { %5987 = vmatpush3.bf16.msra.mxu0 %v7639_v1  ;;  %v5998_v15 = vpack.c.bf16 %v3154_v55, %v3147_v41  ;;  %v7914_v22 = vand.u32 4294901760, %v7632_v7  ;;  %v7912_v41 = vand.u32 4294901760, %v7641_v45  ;;  %v7911_v55 = vand.u32 4294901760, %v7643_v32 }
 0x901   : > { %5988 = vmatprep.subr.bf16.mxu0 %v6310_v4  ;;  %v3167_v48 = vsub.f32 %v7499_v54, %v7917_v53  ;;  %v7969_v5 = vand.u32 4294901760, %v7632_v7  ;;  %v7970_v29 = vand.u32 4294901760, %v7634_v39 }
 0x902   : > { %v3188_v27 = vsub.f32 %v7632_v7, %v7914_v22 }
 0x903   : > { %v3168_v17 = vand.u32 4294901760, %v3167_v48  ;;  %v3202_v48 = vsub.f32 %v7641_v45, %v7912_v41 }
 0x904   : > { %v3189_v9 = vand.u32 4294901760, %v3188_v27  ;;  %v6019_v27 = vpack.c.bf16 %v7489_v42, %v7486_v35  ;;  %v7967_v42 = vand.u32 4294901760, %v7627_v38  ;;  %v7968_v35 = vand.u32 4294901760, %v7629_v6 }
 0x905   : > { %v6001_v50 = vpack.c.bf16 %v3168_v17, %v3161_v20  ;;  %v3209_v20 = vsub.f32 %v7643_v32, %v7911_v55  ;;  %v3203_v17 = vand.u32 4294901760, %v3202_v48  ;;  %v6031_v48 = vpack.c.bf16 %v7634_v39, %v7632_v7 }
 0x906   : > { %v6007_v26 = vpack.c.bf16 %v3196_v62, %v3189_v9  ;;  %v6025_v9 = vpack.c.bf16 %v7499_v54, %v7497_v51  ;;  %v6028_v62 = vpack.c.bf16 %v7629_v6, %v7627_v38  ;;  %v7971_v51 = vand.u32 4294901760, %v7641_v45 }
 0x907   : > { %v3210_v24 = vand.u32 4294901760, %v3209_v20  ;;  %v6034_v20 = vpack.c.bf16 %v7643_v32, %v7641_v45  ;;  %v7972_v54 = vand.u32 4294901760, %v7643_v32 }
 0x909   : > { %v6010_v3 = vpack.c.bf16 %v3210_v24, %v3203_v17  ;;  %v3822_v17 = vld [vmem:[#allocation4 + $0x218] ss:$0 sm:$0xff] }
 0x9d1   : > { %v2983_v24 = vpop.f32.mrb[4].mxu1 }
 0x9d2   : > { %v6112_v55 = vadd.f32 %v3822_v17, %v2983_v24  ;;  %v5177_v41 = vpop.f32.mrb[5].mxu1 }
 0x9d4   : > { %v2987_v43 = vmax.f32 %v6112_v55, 0.0 }
 0x9d6   : > { %v7729_v22 = vand.u32 4294901760, %v2987_v43  ;;  %3654 = vst [vmem:[%s6426_s7 + $0x18] sm:$0xff] %v2987_v43 }
 0x9d8   : > { %v3091_v37 = vsub.f32 %v2987_v43, %v7729_v22 }
 0x9da   : > { %v3092_v33 = vand.u32 4294901760, %v3091_v37 }
 0x9dc   : > { %v3093_v53 = vsub.f32 %v3091_v37, %v3092_v33 }
 0x9de   : > { %v3094_v23 = vand.u32 4294901760, %v3093_v53 }
 0x9e0   : > { %5211 = vmatmul.mubr.f32.vlgmr.msra.gmra.mrb[4].mxu0 %v3094_v23 }
 0x9e1   : > { %5990 = vmatpush3.bf16.msra.mxu0 %v7661_v8  ;;  %5245 = vmatprep.mubr.msk.f32.mxu0 %vm6311_vm1, %v7947_v12  ;;  %v6061_v8 = vpack.c.bf16 %v3110_v47, %v3103_v13  ;;  %v6073_v13 = vpack.c.bf16 %v7966_v63, %v7965_v0  ;;  %v6076_v47 = vpack.c.bf16 %v7968_v35, %v7967_v42 }
 0x9e2   : > { %5991 = vmatprep.subr.bf16.mxu0 %v6310_v4 }
 0x9e5   : > { %5993 = vmatpush3.bf16.msra.mxu0 %v7665_v61  ;;  %v6064_v61 = vpack.c.bf16 %v3124_v18, %v3117_v11  ;;  %v6079_v11 = vpack.c.bf16 %v7970_v29, %v7969_v5  ;;  %v6082_v18 = vpack.c.bf16 %v7972_v54, %v7971_v51 }
 0x9e6   : > { %5994 = vmatprep.subr.bf16.mxu0 %v6310_v4 }
 0x9e9   : > { %5996 = vmatpush3.bf16.msra.mxu0 %v5995_v30 }
 0x9ea   : > { %5997 = vmatprep.subr.bf16.mxu0 %v6310_v4 }
 0x9ed   : > { %5999 = vmatpush3.bf16.msra.mxu0 %v5998_v15 }
 0x9ee   : > { %6000 = vmatprep.subr.bf16.mxu0 %v6310_v4 }
 0x9f1   : > { %6002 = vmatpush3.bf16.msra.mxu0 %v6001_v50 }
 0x9f2   : > { %6003 = vmatprep.subr.bf16.mxu0 %v6310_v4 }
 0x9f5   : > { %6005 = vmatpush3.bf16.msra.mxu0 %v6004_v58 }
 0x9f6   : > { %6006 = vmatprep.subr.bf16.mxu0 %v6310_v4 }
 0x9f9   : > { %6008 = vmatpush3.bf16.msra.mxu0 %v6007_v26 }
 0x9fa   : > { %6009 = vmatprep.subr.bf16.mxu0 %v6310_v4 }
 0x9fd   : > { %6011 = vmatpush3.bf16.msra.mxu0 %v6010_v3 }
 0x9fe   : > { %6012 = vmatprep.subr.bf16.mxu0 %v6310_v4 }
 0xa00   : > { %5246 = vmatmul.mubr.f32.vlgmr.msra.gmra.mrb[4].mxu0 %v7729_v22 }
 0xa01   : > { %6014 = vmatpush3.bf16.msra.mxu0 %v6013_v46  ;;  %5280 = vmatprep.mubr.msk.f32.mxu0 %vm6311_vm1, %v7947_v12 }
 0xa02   : > { %6015 = vmatprep.subr.bf16.mxu0 %v6310_v4 }
 0xa05   : > { %6017 = vmatpush3.bf16.msra.mxu0 %v6016_v52 }
 0xa06   : > { %6018 = vmatprep.subr.bf16.mxu0 %v6310_v4 }
 0xa09   : > { %6020 = vmatpush3.bf16.msra.mxu0 %v6019_v27 }
 0xa0a   : > { %6021 = vmatprep.subr.bf16.mxu0 %v6310_v4 }
 0xa0d   : > { %6023 = vmatpush3.bf16.msra.mxu0 %v6022_v16 }
 0xa0e   : > { %6024 = vmatprep.subr.bf16.mxu0 %v6310_v4 }
 0xa11   : > { %6026 = vmatpush3.bf16.msra.mxu0 %v6025_v9 }
 0xa12   : > { %6027 = vmatprep.subr.bf16.mxu0 %v6310_v4 }
 0xa15   : > { %6029 = vmatpush3.bf16.msra.mxu0 %v6028_v62 }
 0xa16   : > { %6030 = vmatprep.subr.bf16.mxu0 %v6310_v4 }
 0xa19   : > { %6032 = vmatpush3.bf16.msra.mxu0 %v6031_v48 }
 0xa1a   : > { %6033 = vmatprep.subr.bf16.mxu0 %v6310_v4 }
 0xa1d   : > { %6035 = vmatpush3.bf16.msra.mxu0 %v6034_v20 }
 0xa1e   : > { %6036 = vmatprep.subr.bf16.mxu0 %v6310_v4 }
 0xa20   : > { %5281 = vmatmul.mubr.f32.vlgmr.msra.gmra.mrb[4].mxu0 %v3091_v37 }
 0xa21   : > { %6038 = vmatpush3.bf16.msra.mxu0 %v7474_v59  ;;  %5315 = vmatprep.mubr.msk.f32.mxu0 %vm6311_vm1, %v7947_v12 }
 0xa22   : > { %6039 = vmatprep.subr.bf16.mxu0 %v6310_v4 }
 0xa25   : > { %6041 = vmatpush3.bf16.msra.mxu0 %v7482_v36 }
 0xa26   : > { %6042 = vmatprep.subr.bf16.mxu0 %v6310_v4 }
 0xa29   : > { %6044 = vmatpush3.bf16.msra.mxu0 %v7505_v21 }
 0xa2a   : > { %6045 = vmatprep.subr.bf16.mxu0 %v6310_v4 }
 0xa2d   : > { %6047 = vmatpush3.bf16.msra.mxu0 %v7513_v2 }
 0xa2e   : > { %6048 = vmatprep.subr.bf16.mxu0 %v6310_v4 }
 0xa31   : > { %6050 = vmatpush3.bf16.msra.mxu0 %v7521_v19 }
 0xa32   : > { %6051 = vmatprep.subr.bf16.mxu0 %v6310_v4 }
 0xa35   : > { %6053 = vmatpush3.bf16.msra.mxu0 %v7621_v34 }
 0xa36   : > { %6054 = vmatprep.subr.bf16.mxu0 %v6310_v4 }
 0xa39   : > { %6056 = vmatpush3.bf16.msra.mxu0 %v7625_v56 }
 0xa3a   : > { %6057 = vmatprep.subr.bf16.mxu0 %v6310_v4 }
 0xa3d   : > { %6059 = vmatpush3.bf16.msra.mxu0 %v7639_v1 }
 0xa3e   : > { %6060 = vmatprep.subr.bf16.mxu0 %v6310_v4 }
 0xa40   : > { %5316 = vmatmul.mubr.f32.vlgmr.msra.gmra.mrb[4].mxu0 %v3092_v33 }
 0xa41   : > { %6062 = vmatpush3.bf16.msra.mxu0 %v6061_v8  ;;  %5350 = vmatprep.mubr.msk.f32.mxu0 %vm6311_vm1, %v7947_v12 }
 0xa42   : > { %6063 = vmatprep.subr.bf16.mxu0 %v6310_v4 }
 0xa45   : > { %6065 = vmatpush3.bf16.msra.mxu0 %v6064_v61 }
 0xa46   : > { %6066 = vmatprep.subr.bf16.mxu0 %v6310_v4 }
 0xa49   : > { %6068 = vmatpush3.bf16.msra.mxu0 %v6067_v10 }
 0xa4a   : > { %6069 = vmatprep.subr.bf16.mxu0 %v6310_v4 }
 0xa4d   : > { %6071 = vmatpush3.bf16.msra.mxu0 %v6070_v14 }
 0xa4e   : > { %6072 = vmatprep.subr.bf16.mxu0 %v6310_v4 }
 0xa51   : > { %6074 = vmatpush3.bf16.msra.mxu0 %v6073_v13 }
 0xa52   : > { %6075 = vmatprep.subr.bf16.mxu0 %v6310_v4 }
 0xa55   : > { %6077 = vmatpush3.bf16.msra.mxu0 %v6076_v47 }
 0xa56   : > { %6078 = vmatprep.subr.bf16.mxu0 %v6310_v4 }
 0xa59   : > { %6080 = vmatpush3.bf16.msra.mxu0 %v6079_v11 }
 0xa5a   : > { %6081 = vmatprep.subr.bf16.mxu0 %v6310_v4 }
 0xa5d   : > { %6083 = vmatpush3.bf16.msra.mxu0 %v6082_v18 }
 0xa5e   : > { %6084 = vmatprep.subr.bf16.mxu0 %v6310_v4 }
 0xa60   : > { %5351 = vmatmul.mubr.f32.vlgmr.msra.gmra.mrb[4].mxu0 %v7729_v22 }
 0xa61   : > { %6086 = vmatpush3.bf16.msra.mxu0 %v7474_v59  ;;  %5385 = vmatprep.mubr.msk.f32.mxu0 %vm6311_vm1, %v7947_v12  ;;  %v3661_v12 = vsel (!%p3824_p9), %vm945_vm2, %v7158_v44, 0.0 }
 0xa62   : > { %6087 = vmatprep.subr.bf16.mxu0 %v6310_v4  ;;  %3665 = vst [vmem:[%s6421_s4 + $0x18] sm:$0xff] (!%p3824_p9), %v3661_v12 }
 0xa65   : > { %6089 = vmatpush3.bf16.msra.mxu0 %v7482_v36  ;;  %v3823_v36 = vld [vmem:[#allocation4 + $0x2a0] ss:$0 sm:$0xff] }
 0xa66   : > { %6090 = vmatprep.subr.bf16.mxu0 %v6310_v4 }
 0xa69   : > { %6092 = vmatpush3.bf16.msra.mxu0 %v7505_v21 }
 0xa6a   : > { %6093 = vmatprep.subr.bf16.mxu0 %v6310_v4 }
 0xa6d   : > { %6095 = vmatpush3.bf16.msra.mxu0 %v7513_v2 }
 0xa6e   : > { %6096 = vmatprep.subr.bf16.mxu0 %v6310_v4 }
 0xa71   : > { %6098 = vmatpush3.bf16.msra.mxu0 %v7521_v19 }
 0xa72   : > { %6099 = vmatprep.subr.bf16.mxu0 %v6310_v4 }
 0xa75   : > { %6101 = vmatpush3.bf16.msra.mxu0 %v7621_v34 }
 0xa76   : > { %6102 = vmatprep.subr.bf16.mxu0 %v6310_v4 }
 0xa79   : > { %6104 = vmatpush3.bf16.msra.mxu0 %v7625_v56 }
 0xa7a   : > { %6105 = vmatprep.subr.bf16.mxu0 %v6310_v4  ;;  %v3660_v4 = vsel (!%p3824_p9), %vm945_vm2, %v7160_v40, 0.0 }
 0xa7b   : > { %3663 = vst [vmem:[%s6421_s4 + $0x8] sm:$0xff] (!%p3824_p9), %v3660_v4 }
 0xa7d   : > { %6107 = vmatpush3.bf16.msra.mxu0 %v7639_v1 }
 0xa80   : > { %5386 = vmatmul.mubr.f32.vlgmr.msra.gmra.mrb[4].mxu0 %v7729_v22 }
 0xb53   : > { %v3646_v59 = vpop.f32.mrb[4].mxu0 }
 0xb54   : > { %v6113_v21 = vadd.f32 %v3823_v36, %v3646_v59  ;;  %v5387_v2 = vpop.f32.mrb[5].mxu0 }
 0xb56   : > { %6232 = vtanh.f32 %v6113_v21 }
 0xb5b   : > { %3659 = sbr.rel (%p3824_p9) target bundleno = 2914 (0xb62), region = 40 }
 0xb60   : > { %v6233_v19 = vpop.eup %6232 }
 0xb61   : > { %3655 = vst [vmem:[%s6426_s7 + $0x20] sm:$0xff] %v6233_v19 }
 0xb62 PF: > { %s15_s16 = sadd.s32 1, %s6304_s16   ;;  %s7973_s12 = smov %s6296_s14 }
 0xb63   : > { %p12_p11 = scmp.ge.s32.totalorder %s15_s16, 18   ;;  %s7974_s13 = smov %s6300_s15 }
 0xb64   : > { %s7975_s14 = smov %s7978_s18  ;;  %s7976_s15 = smov %s7982_s19 }
 0xb65   :  { %14 = sbr.rel (!%p12_p11) target bundleno = 3 (0x3), region = 85 }
 0xb6c   :  { %3711 = vsyncpa [#allocation5], 1 }
 0xb6d   :  { %3713 = vsyncpa [#allocation5 + $0x1], 1 }

</bundles_post_ra>
